<compile_context>
chip_gen: v7x
topology: tpu7x:2x2x1
jax: 0.10.0
libtpu: 0.0.40
codegen_flags: <defaults>
</compile_context>

<pallas_src>
import functools

import jax
import jax.numpy as jnp
from jax import lax
from jax.experimental import pallas as pl
from jax.experimental.pallas import tpu as pltpu


# ------------------------------- small helpers --------------------------------

def _round_up(x, m):
    return (x + m - 1) // m * m


def _pick_tile(dim, candidates):
    for c in candidates:
        if dim % c == 0:
            return c
    return dim


@functools.lru_cache(maxsize=None)
def _vmem_limit_bytes():
    # Per-generation scoped-VMEM budget: 3/4 of physical (v7x: ~48 MiB,
    # v5e/v6e: ~96 MiB), conservative 48 MiB fallback if the query fails.
    try:
        cap = int(pltpu.get_tpu_info().vmem_capacity_bytes)
    except Exception:
        cap = 64 * 1024 * 1024
    return (cap * 3) // 4


def _sigmoid(x):
    # sigmoid(x) == 0.5 * (1 + tanh(0.5 x)) -> one EUP op instead of exp+recip.
    return 0.5 * (jnp.tanh(0.5 * x) + 1.0)


# ------------------ fused LSTM layer kernel (projection + recurrence) ---------

def _lstm_layer_kernel(x_ref, wih_ref, whh_ref, b_ref, h0_ref, c0_ref,
                       out_ref, cn_ref, gx_sc, h_sc, c_sc):
    tc = pl.program_id(1)
    t_chunk, bb, in_dim = x_ref.shape
    H = h_sc.shape[1]

    @pl.when(tc == 0)
    def _():
        h_sc[...] = h0_ref[...].astype(jnp.float32)
        c_sc[...] = c0_ref[...].astype(jnp.float32)

    # Fused input projection for this time chunk: one big MXU matmul into VMEM
    # scratch -> the projected gates never round-trip through HBM.
    x_chunk = x_ref[...].reshape(t_chunk * bb, in_dim)
    gx_sc[...] = (jnp.dot(x_chunk, wih_ref[...],
                          preferred_element_type=jnp.float32)
                  + b_ref[...]).reshape(t_chunk, bb, 4 * H)

    whh = whh_ref[...]                                  # resident (H, 4H)

    def step(t, carry):
        h, c = carry
        gates = gx_sc[t] + jnp.dot(h.astype(whh.dtype), whh,
                                   preferred_element_type=jnp.float32)
        # H is a multiple of 128 -> every gate slice is lane-aligned.
        i_g = _sigmoid(gates[:, 0 * H:1 * H])
        f_g = _sigmoid(gates[:, 1 * H:2 * H])
        g_g = jnp.tanh(gates[:, 2 * H:3 * H])
        o_g = _sigmoid(gates[:, 3 * H:4 * H])
        c_new = f_g * c + i_g * g_g
        h_new = o_g * jnp.tanh(c_new)
        out_ref[t] = h_new.astype(out_ref.dtype)
        return h_new, c_new

    # Short fixed trip-count -> unroll for LLO scheduler visibility.
    h_fin, c_fin = lax.fori_loop(0, t_chunk, step, (h_sc[...], c_sc[...]),
                                 unroll=(t_chunk <= 16))
    h_sc[...] = h_fin
    c_sc[...] = c_fin

    @pl.when(tc == pl.num_programs(1) - 1)
    def _():
        cn_ref[...] = c_fin.astype(cn_ref.dtype)


def lstm_layer(x_tm, w_ih_t, w_hh_t, bias, h0, c0, *, time_chunk=None):
    """One LSTM layer over all timesteps.

    x_tm:   (T, B, In)  time-major input (B mult of 8, In mult of 128)
    w_ih_t: (In, 4H), w_hh_t: (H, 4H), bias: (1, 4H)   (H mult of 128)
    h0/c0:  (B, H)
    Returns out_tm (T, B, H), cn (B, H).   hn == out_tm[-1].
    """
    T, B, in_dim = x_tm.shape
    H = w_hh_t.shape[0]
    G = w_hh_t.shape[1]

    if time_chunk is not None and T % time_chunk == 0:
        t_chunk = time_chunk
    else:
        t_chunk = _pick_tile(T, (32, 16, 8, 4, 2, 1))

    # Split batch across the two v7x TensorCores when big enough
    # (recurrence is independent per batch row); single block otherwise.
    b_block = B // 2 if (B % 16 == 0 and B >= 16) else B
    nb = B // b_block
    ntc = T // t_chunk

    grid_spec = pltpu.PrefetchScalarGridSpec(
        num_scalar_prefetch=0,
        grid=(nb, ntc),
        in_specs=[
            pl.BlockSpec((t_chunk, b_block, in_dim), lambda bi, tc: (tc, bi, 0)),
            pl.BlockSpec((in_dim, G), lambda bi, tc: (0, 0)),   # W_ih^T resident
            pl.BlockSpec((H, G), lambda bi, tc: (0, 0)),        # W_hh^T resident
            pl.BlockSpec((1, G), lambda bi, tc: (0, 0)),        # bias resident
            pl.BlockSpec((b_block, H), lambda bi, tc: (bi, 0)), # h0
            pl.BlockSpec((b_block, H), lambda bi, tc: (bi, 0)), # c0
        ],
        out_specs=[
            pl.BlockSpec((t_chunk, b_block, H), lambda bi, tc: (tc, bi, 0)),
            pl.BlockSpec((b_block, H), lambda bi, tc: (bi, 0)),
        ],
        scratch_shapes=[
            pltpu.VMEM((t_chunk, b_block, G), jnp.float32),   # projected gates
            pltpu.VMEM((b_block, H), jnp.float32),            # h carry
            pltpu.VMEM((b_block, H), jnp.float32),            # c carry
        ],
    )
    out_shapes = (
        jax.ShapeDtypeStruct((T, B, H), x_tm.dtype),   # out (time-major)
        jax.ShapeDtypeStruct((B, H), x_tm.dtype),      # cn
    )
    return pl.pallas_call(
        _lstm_layer_kernel,
        out_shape=out_shapes,
        grid_spec=grid_spec,
        compiler_params=pltpu.CompilerParams(
            dimension_semantics=("parallel", "arbitrary"),
            vmem_limit_bytes=_vmem_limit_bytes()),
    )(x_tm, w_ih_t, w_hh_t, bias, h0, c0)


# --------------------- tiled matmul + bias kernel (FC head) -------------------

def _matmul_bias_kernel(x_ref, w_ref, b_ref, o_ref, acc_ref):
    @pl.when(pl.program_id(2) == 0)
    def _():
        acc_ref[...] = jnp.zeros_like(acc_ref)

    acc_ref[...] += jnp.dot(x_ref[...], w_ref[...],
                            preferred_element_type=jnp.float32)

    @pl.when(pl.program_id(2) == pl.num_programs(2) - 1)
    def _():
        o_ref[...] = (acc_ref[...] + b_ref[...]).astype(o_ref.dtype)


def matmul_bias(x2d, w_t, bias):
    """x2d: (N, K), w_t: (K, V), bias: (1, V) -> (N, V). K, V multiples of 128."""
    N, K = x2d.shape
    Kw, V = w_t.shape
    assert K == Kw and K % 128 == 0 and V % 128 == 0, "lane dims must be padded"

    # Hardened row tiling: pad rows to the tile instead of a full-dim fallback.
    tn = min(512, _round_up(N, 8))
    n_pad = _round_up(N, tn)
    if n_pad != N:
        x2d = jnp.pad(x2d, ((0, n_pad - N), (0, 0)))
    tv = _pick_tile(V, (512, 256, 128))
    tk = _pick_tile(K, (512, 256, 128))

    grid_spec = pltpu.PrefetchScalarGridSpec(
        num_scalar_prefetch=0,
        grid=(n_pad // tn, V // tv, K // tk),
        in_specs=[
            pl.BlockSpec((tn, tk), lambda i, j, k: (i, k)),
            pl.BlockSpec((tk, tv), lambda i, j, k: (k, j)),
            pl.BlockSpec((1, tv), lambda i, j, k: (0, j)),
        ],
        out_specs=pl.BlockSpec((tn, tv), lambda i, j, k: (i, j)),
        scratch_shapes=[pltpu.VMEM((tn, tv), jnp.float32)],
    )
    out = pl.pallas_call(
        _matmul_bias_kernel,
        out_shape=jax.ShapeDtypeStruct((n_pad, V), x2d.dtype),
        grid_spec=grid_spec,
        compiler_params=pltpu.CompilerParams(
            dimension_semantics=("parallel", "parallel", "arbitrary"),
            vmem_limit_bytes=_vmem_limit_bytes()),
    )(x2d, w_t, bias)
    return out[:N] if n_pad != N else out


# ---------------------- gate-block-aware weight padding ------------------------

def _pad_gate_mat(w_t, H, H_pad, in_dim, in_pad):
    """(in_dim, 4H) -> (in_pad, 4*H_pad); each [i|f|g|o] block padded to H_pad."""
    blocks = [jnp.pad(w_t[:, g * H:(g + 1) * H],
                      ((0, in_pad - in_dim), (0, H_pad - H))) for g in range(4)]
    return jnp.concatenate(blocks, axis=1)


def _pad_gate_vec(b, H, H_pad):
    blocks = [jnp.pad(b[g * H:(g + 1) * H], (0, H_pad - H)) for g in range(4)]
    return jnp.concatenate(blocks)[None, :]


# ------------------------------ Model wrapper ---------------------------------

def init_params(key, vocab_size, hidden_size, num_layers):
    """Deterministic init mirroring PyTorch's U(-1/sqrt(H), 1/sqrt(H))."""
    bound = 1.0 / jnp.sqrt(jnp.float32(hidden_size))
    params = {"lstm": [], "fc": {}}
    for layer in range(num_layers):
        in_size = vocab_size if layer == 0 else hidden_size
        key, k1, k2, k3, k4 = jax.random.split(key, 5)
        w_ih = jax.random.uniform(k1, (4 * hidden_size, in_size),
                                  jnp.float32, -bound, bound)
        w_hh = jax.random.uniform(k2, (4 * hidden_size, hidden_size),
                                  jnp.float32, -bound, bound)
        b_ih = jax.random.uniform(k3, (4 * hidden_size,),
                                  jnp.float32, -bound, bound)
        b_hh = jax.random.uniform(k4, (4 * hidden_size,),
                                  jnp.float32, -bound, bound)
        params["lstm"].append({
            "w_ih_t": w_ih.T,                 # (In, 4H)
            "w_hh_t": w_hh.T,                 # (H, 4H)
            "bias": b_ih + b_hh,              # (4H,)
        })
    key, k1, k2 = jax.random.split(key, 3)
    w_fc = jax.random.uniform(k1, (vocab_size, hidden_size),
                              jnp.float32, -bound, bound)
    b_fc = jax.random.uniform(k2, (vocab_size,),
                              jnp.float32, -bound, bound)
    params["fc"] = {"w_t": w_fc.T, "b": b_fc[None, :]}   # (H, V), (1, V)
    return params


@functools.partial(jax.jit,
                   static_argnames=("hidden_size", "num_layers", "time_chunk"))
def lstm_model_forward(params, x, hidden_size, num_layers,
                       h0=None, c0=None, time_chunk=None):
    """x: (B, T, vocab) -> (out (B, T, vocab), (hn, cn) each (L, B, H))."""
    B, T, V = x.shape
    H = hidden_size
    H_pad = _round_up(H, 128)
    V_pad = _round_up(V, 128)
    B_pad = _round_up(B, 8)

    if h0 is None or c0 is None:
        h0 = jnp.zeros((num_layers, B, H), x.dtype)
        c0 = jnp.zeros((num_layers, B, H), x.dtype)

    # One transpose to time-major for the whole model (inter-layer activations
    # stay time-major); pad batch to 8 sublanes and lane dims to 128.
    x_tm = jnp.transpose(x, (1, 0, 2))
    x_tm = jnp.pad(x_tm, ((0, 0), (0, B_pad - B), (0, V_pad - V)))
    h0p = jnp.pad(h0, ((0, 0), (0, B_pad - B), (0, H_pad - H)))
    c0p = jnp.pad(c0, ((0, 0), (0, B_pad - B), (0, H_pad - H)))

    layer_in = x_tm
    in_dim, in_pad = V, V_pad
    hns, cns = [], []
    for layer in range(num_layers):
        p = params["lstm"][layer]
        w_ih_t = _pad_gate_mat(p["w_ih_t"], H, H_pad, in_dim, in_pad)
        w_hh_t = _pad_gate_mat(p["w_hh_t"], H, H_pad, H, H_pad)
        bias = _pad_gate_vec(p["bias"], H, H_pad)
        out_tm, cn = lstm_layer(layer_in, w_ih_t, w_hh_t, bias,
                                h0p[layer], c0p[layer], time_chunk=time_chunk)
        hns.append(out_tm[-1])                 # hn == last timestep's h
        cns.append(cn)
        layer_in = out_tm                      # (T, B_pad, H_pad), time-major
        in_dim, in_pad = H, H_pad
        # TODO(synk): inter-layer dropout (training only) is identity here.

    hn = jnp.stack(hns, axis=0)[:, :B, :H]
    cn = jnp.stack(cns, axis=0)[:, :B, :H]

    w_fc_t = jnp.pad(params["fc"]["w_t"], ((0, H_pad - H), (0, V_pad - V)))
    b_fc = jnp.pad(params["fc"]["b"], ((0, 0), (0, V_pad - V)))
    out_flat = matmul_bias(layer_in.reshape(T * B_pad, H_pad), w_fc_t, b_fc)
    out = jnp.transpose(out_flat.reshape(T, B_pad, V_pad), (1, 0, 2))[:B, :, :V]
    return out, (hn, cn)


# ------------------------- Pure-JAX reference (check) -------------------------

def _reference_forward(params, x, hidden_size, num_layers):
    B, T, _ = x.shape
    H = hidden_size
    layer_in = x                                           # (B, T, In)
    hns, cns = [], []
    for layer in range(num_layers):
        p = params["lstm"][layer]
        hh = jnp.zeros((B, H), jnp.float32)
        cc = jnp.zeros((B, H), jnp.float32)
        outs = []
        for t in range(T):
            gates = (layer_in[:, t, :] @ p["w_ih_t"] + p["bias"]
                     + hh @ p["w_hh_t"])
            i_g = jax.nn.sigmoid(gates[:, 0 * H:1 * H])
            f_g = jax.nn.sigmoid(gates[:, 1 * H:2 * H])
            g_g = jnp.tanh(gates[:, 2 * H:3 * H])
            o_g = jax.nn.sigmoid(gates[:, 3 * H:4 * H])
            cc = f_g * cc + i_g * g_g
            hh = o_g * jnp.tanh(cc)
            outs.append(hh)
        layer_in = jnp.stack(outs, axis=1)                 # (B, T, H)
        hns.append(hh)
        cns.append(cc)
    out = layer_in @ params["fc"]["w_t"] + params["fc"]["b"]
    return out, (jnp.stack(hns, 0), jnp.stack(cns, 0))


# ----------------------------------- Main --------------------------------------

if __name__ == "__main__":
    vocab_size = 16
    hidden_size = 32
    num_layers = 2
    dropout = 0.1          # inference forward: dropout is identity
    B, T = 2, 8

    key = jax.random.PRNGKey(0)
    key, pkey, xkey = jax.random.split(key, 3)
    params = init_params(pkey, vocab_size, hidden_size, num_layers)
    x = jax.random.normal(xkey, (B, T, vocab_size), jnp.float32)

    # time_chunk=4 -> 2 time chunks at T=8, exercising the chunked carry path.
    out, (hn, cn) = lstm_model_forward(params, x, hidden_size, num_layers,
                                       time_chunk=4)
    jax.block_until_ready((out, hn, cn))

    assert out.shape == (B, T, vocab_size)
    assert hn.shape == (num_layers, B, hidden_size)
    assert cn.shape == (num_layers, B, hidden_size)

    ref_out, (ref_hn, ref_cn) = _reference_forward(params, x, hidden_size,
                                                   num_layers)
    assert jnp.allclose(out, ref_out, atol=1e-3, rtol=1e-3)
    assert jnp.allclose(hn, ref_hn, atol=1e-3, rtol=1e-3)
    assert jnp.allclose(cn, ref_cn, atol=1e-3, rtol=1e-3)

    print("KERNEL_OK")
</pallas_src>

<mosaic_0001>
module attributes {stable_mosaic.version = 11 : i64} {
  func.func @_lstm_layer_kernel(%arg0: i32, %arg1: i32, %arg2: memref<4x8x128xf32, #tpu.memory_space<vmem>>, %arg3: memref<128x512xf32, #tpu.memory_space<vmem>>, %arg4: memref<128x512xf32, #tpu.memory_space<vmem>>, %arg5: memref<1x512xf32, #tpu.memory_space<vmem>>, %arg6: memref<8x128xf32, #tpu.memory_space<vmem>>, %arg7: memref<8x128xf32, #tpu.memory_space<vmem>>, %arg8: memref<4x8x128xf32, #tpu.memory_space<vmem>>, %arg9: memref<8x128xf32, #tpu.memory_space<vmem>>, %arg10: memref<4x8x512xf32, #tpu.memory_space<vmem>>, %arg11: memref<8x128xf32, #tpu.memory_space<vmem>>, %arg12: memref<8x128xf32, #tpu.memory_space<vmem>>) attributes {dimension_semantics = [#tpu.dimension_semantics<parallel>, #tpu.dimension_semantics<arbitrary>], iteration_bounds = array<i64: 1, 2>, scalar_prefetch = 0 : i64, scratch_operands = 3 : i64, tpu.core_type = #tpu.core_type<tc>, window_params = [{transform_indices = @transform_0, window_bounds = array<i64: 4, 8, 128>}, {pipeline_mode = #tpu.pipeline_mode<synchronous>, transform_indices = @transform_1, window_bounds = array<i64: 128, 512>}, {pipeline_mode = #tpu.pipeline_mode<synchronous>, transform_indices = @transform_2, window_bounds = array<i64: 128, 512>}, {pipeline_mode = #tpu.pipeline_mode<synchronous>, transform_indices = @transform_3, window_bounds = array<i64: 1, 512>}, {transform_indices = @transform_4, window_bounds = array<i64: 8, 128>}, {transform_indices = @transform_5, window_bounds = array<i64: 8, 128>}, {transform_indices = @transform_6, window_bounds = array<i64: 4, 8, 128>}, {transform_indices = @transform_7, window_bounds = array<i64: 8, 128>}]} {
    %c0_i32 = arith.constant 0 : i32
    %0 = arith.cmpi eq, %arg1, %c0_i32 : i32
    %1 = arith.extui %0 : i1 to i32
    %c0_i32_0 = arith.constant 0 : i32
    %2 = arith.cmpi ne, %1, %c0_i32_0 : i32
    scf.if %2 {
      %c0_79 = arith.constant 0 : index
      %c0_80 = arith.constant 0 : index
      %180 = vector.load %arg6[%c0_79, %c0_80] : memref<8x128xf32, #tpu.memory_space<vmem>>, vector<8x128xf32>
      %c0_81 = arith.constant 0 : index
      %c0_82 = arith.constant 0 : index
      %181 = vector.load %arg11[%c0_81, %c0_82] : memref<8x128xf32, #tpu.memory_space<vmem>>, vector<8x128xf32>
      tpu.vector_store %arg11[%c0_81, %c0_82], %180 {strides = array<i32>} : memref<8x128xf32, #tpu.memory_space<vmem>>, vector<8x128xf32>,
      %c0_83 = arith.constant 0 : index
      %c0_84 = arith.constant 0 : index
      %182 = vector.load %arg7[%c0_83, %c0_84] : memref<8x128xf32, #tpu.memory_space<vmem>>, vector<8x128xf32>
      %c0_85 = arith.constant 0 : index
      %c0_86 = arith.constant 0 : index
      %183 = vector.load %arg12[%c0_85, %c0_86] : memref<8x128xf32, #tpu.memory_space<vmem>>, vector<8x128xf32>
      tpu.vector_store %arg12[%c0_85, %c0_86], %182 {strides = array<i32>} : memref<8x128xf32, #tpu.memory_space<vmem>>, vector<8x128xf32>,
    } else {
    }
    %c0 = arith.constant 0 : index
    %c0_1 = arith.constant 0 : index
    %c0_2 = arith.constant 0 : index
    %3 = vector.load %arg2[%c0, %c0_1, %c0_2] : memref<4x8x128xf32, #tpu.memory_space<vmem>>, vector<4x8x128xf32>
    %4 = vector.shape_cast %3 : vector<4x8x128xf32> to vector<32x128xf32>
    %c0_3 = arith.constant 0 : index
    %c0_4 = arith.constant 0 : index
    %5 = vector.load %arg3[%c0_3, %c0_4] : memref<128x512xf32, #tpu.memory_space<vmem>>, vector<128x512xf32>
    %cst = arith.constant dense<0.000000e+00> : vector<32x512xf32>
    %6 = tpu.matmul %4, %5, %cst {dimension_numbers = #tpu.dot_dimension_numbers<[1], [0], [0], [1], [0, 0, 1, 1], [], []>} : vector<32x128xf32>, vector<128x512xf32>, vector<32x512xf32> -> vector<32x512xf32>
    %c0_5 = arith.constant 0 : index
    %c0_6 = arith.constant 0 : index
    %7 = vector.load %arg5[%c0_5, %c0_6] : memref<1x512xf32, #tpu.memory_space<vmem>>, vector<1x512xf32>
    %8 = vector.broadcast %7 : vector<1x512xf32> to vector<32x512xf32>
    %9 = arith.addf %6, %8 : vector<32x512xf32>
    %10 = vector.shape_cast %9 : vector<32x512xf32> to vector<4x8x512xf32>
    %c0_7 = arith.constant 0 : index
    %c0_8 = arith.constant 0 : index
    %c0_9 = arith.constant 0 : index
    %11 = vector.load %arg10[%c0_7, %c0_8, %c0_9] : memref<4x8x512xf32, #tpu.memory_space<vmem>>, vector<4x8x512xf32>
    tpu.vector_store %arg10[%c0_7, %c0_8, %c0_9], %10 {strides = array<i32>} : memref<4x8x512xf32, #tpu.memory_space<vmem>>, vector<4x8x512xf32>,
    %c0_10 = arith.constant 0 : index
    %c0_11 = arith.constant 0 : index
    %12 = vector.load %arg4[%c0_10, %c0_11] : memref<128x512xf32, #tpu.memory_space<vmem>>, vector<128x512xf32>
    %c0_12 = arith.constant 0 : index
    %c0_13 = arith.constant 0 : index
    %13 = vector.load %arg11[%c0_12, %c0_13] : memref<8x128xf32, #tpu.memory_space<vmem>>, vector<8x128xf32>
    %c0_14 = arith.constant 0 : index
    %c0_15 = arith.constant 0 : index
    %14 = vector.load %arg12[%c0_14, %c0_15] : memref<8x128xf32, #tpu.memory_space<vmem>>, vector<8x128xf32>
    %c0_i32_16 = arith.constant 0 : i32
    %15 = arith.index_cast %c0_i32_16 : i32 to index
    %c0_17 = arith.constant 0 : index
    %c0_18 = arith.constant 0 : index
    %16 = vector.load %arg10[%15, %c0_17, %c0_18] : memref<4x8x512xf32, #tpu.memory_space<vmem>>, vector<1x8x512xf32>
    %17 = vector.shape_cast %16 : vector<1x8x512xf32> to vector<8x512xf32>
    %cst_19 = arith.constant dense<0.000000e+00> : vector<8x512xf32>
    %18 = tpu.matmul %13, %12, %cst_19 {dimension_numbers = #tpu.dot_dimension_numbers<[1], [0], [0], [1], [0, 0, 1, 1], [], []>} : vector<8x128xf32>, vector<128x512xf32>, vector<8x512xf32> -> vector<8x512xf32>
    %19 = arith.addf %17, %18 : vector<8x512xf32>
    %20 = vector.extract_strided_slice %19 {offsets = [0, 0], sizes = [8, 128], strides = [1, 1]} : vector<8x512xf32> to vector<8x128xf32>
    %cst_20 = arith.constant 5.000000e-01 : f32
    %21 = vector.broadcast %cst_20 : f32 to vector<8x128xf32>
    %22 = arith.mulf %21, %20 : vector<8x128xf32>
    %23 = math.tanh %22 : vector<8x128xf32>
    %cst_21 = arith.constant 1.000000e+00 : f32
    %24 = vector.broadcast %cst_21 : f32 to vector<8x128xf32>
    %25 = arith.addf %23, %24 : vector<8x128xf32>
    %cst_22 = arith.constant 5.000000e-01 : f32
    %26 = vector.broadcast %cst_22 : f32 to vector<8x128xf32>
    %27 = arith.mulf %26, %25 : vector<8x128xf32>
    %28 = vector.extract_strided_slice %19 {offsets = [0, 128], sizes = [8, 128], strides = [1, 1]} : vector<8x512xf32> to vector<8x128xf32>
    %cst_23 = arith.constant 5.000000e-01 : f32
    %29 = vector.broadcast %cst_23 : f32 to vector<8x128xf32>
    %30 = arith.mulf %29, %28 : vector<8x128xf32>
    %31 = math.tanh %30 : vector<8x128xf32>
    %cst_24 = arith.constant 1.000000e+00 : f32
    %32 = vector.broadcast %cst_24 : f32 to vector<8x128xf32>
    %33 = arith.addf %31, %32 : vector<8x128xf32>
    %cst_25 = arith.constant 5.000000e-01 : f32
    %34 = vector.broadcast %cst_25 : f32 to vector<8x128xf32>
    %35 = arith.mulf %34, %33 : vector<8x128xf32>
    %36 = vector.extract_strided_slice %19 {offsets = [0, 256], sizes = [8, 128], strides = [1, 1]} : vector<8x512xf32> to vector<8x128xf32>
    %37 = math.tanh %36 : vector<8x128xf32>
    %38 = vector.extract_strided_slice %19 {offsets = [0, 384], sizes = [8, 128], strides = [1, 1]} : vector<8x512xf32> to vector<8x128xf32>
    %cst_26 = arith.constant 5.000000e-01 : f32
    %39 = vector.broadcast %cst_26 : f32 to vector<8x128xf32>
    %40 = arith.mulf %39, %38 : vector<8x128xf32>
    %41 = math.tanh %40 : vector<8x128xf32>
    %cst_27 = arith.constant 1.000000e+00 : f32
    %42 = vector.broadcast %cst_27 : f32 to vector<8x128xf32>
    %43 = arith.addf %41, %42 : vector<8x128xf32>
    %cst_28 = arith.constant 5.000000e-01 : f32
    %44 = vector.broadcast %cst_28 : f32 to vector<8x128xf32>
    %45 = arith.mulf %44, %43 : vector<8x128xf32>
    %46 = arith.mulf %35, %14 : vector<8x128xf32>
    %47 = arith.mulf %27, %37 : vector<8x128xf32>
    %48 = arith.addf %46, %47 : vector<8x128xf32>
    %49 = math.tanh %48 : vector<8x128xf32>
    %50 = arith.mulf %45, %49 : vector<8x128xf32>
    %51 = arith.index_cast %c0_i32_16 : i32 to index
    %c0_29 = arith.constant 0 : index
    %c0_30 = arith.constant 0 : index
    %52 = vector.load %arg8[%51, %c0_29, %c0_30] : memref<4x8x128xf32, #tpu.memory_space<vmem>>, vector<1x8x128xf32>
    %53 = vector.shape_cast %52 : vector<1x8x128xf32> to vector<8x128xf32>
    %54 = vector.shape_cast %50 : vector<8x128xf32> to vector<1x8x128xf32>
    tpu.vector_store %arg8[%51, %c0_29, %c0_30], %54 {strides = array<i32>} : memref<4x8x128xf32, #tpu.memory_space<vmem>>, vector<1x8x128xf32>,
    %c1_i32 = arith.constant 1 : i32
    %55 = arith.index_cast %c1_i32 : i32 to index
    %c0_31 = arith.constant 0 : index
    %c0_32 = arith.constant 0 : index
    %56 = vector.load %arg10[%55, %c0_31, %c0_32] : memref<4x8x512xf32, #tpu.memory_space<vmem>>, vector<1x8x512xf32>
    %57 = vector.shape_cast %56 : vector<1x8x512xf32> to vector<8x512xf32>
    %cst_33 = arith.constant dense<0.000000e+00> : vector<8x512xf32>
    %58 = tpu.matmul %50, %12, %cst_33 {dimension_numbers = #tpu.dot_dimension_numbers<[1], [0], [0], [1], [0, 0, 1, 1], [], []>} : vector<8x128xf32>, vector<128x512xf32>, vector<8x512xf32> -> vector<8x512xf32>
    %59 = arith.addf %57, %58 : vector<8x512xf32>
    %60 = vector.extract_strided_slice %59 {offsets = [0, 0], sizes = [8, 128], strides = [1, 1]} : vector<8x512xf32> to vector<8x128xf32>
    %cst_34 = arith.constant 5.000000e-01 : f32
    %61 = vector.broadcast %cst_34 : f32 to vector<8x128xf32>
    %62 = arith.mulf %61, %60 : vector<8x128xf32>
    %63 = math.tanh %62 : vector<8x128xf32>
    %cst_35 = arith.constant 1.000000e+00 : f32
    %64 = vector.broadcast %cst_35 : f32 to vector<8x128xf32>
    %65 = arith.addf %63, %64 : vector<8x128xf32>
    %cst_36 = arith.constant 5.000000e-01 : f32
    %66 = vector.broadcast %cst_36 : f32 to vector<8x128xf32>
    %67 = arith.mulf %66, %65 : vector<8x128xf32>
    %68 = vector.extract_strided_slice %59 {offsets = [0, 128], sizes = [8, 128], strides = [1, 1]} : vector<8x512xf32> to vector<8x128xf32>
    %cst_37 = arith.constant 5.000000e-01 : f32
    %69 = vector.broadcast %cst_37 : f32 to vector<8x128xf32>
    %70 = arith.mulf %69, %68 : vector<8x128xf32>
    %71 = math.tanh %70 : vector<8x128xf32>
    %cst_38 = arith.constant 1.000000e+00 : f32
    %72 = vector.broadcast %cst_38 : f32 to vector<8x128xf32>
    %73 = arith.addf %71, %72 : vector<8x128xf32>
    %cst_39 = arith.constant 5.000000e-01 : f32
    %74 = vector.broadcast %cst_39 : f32 to vector<8x128xf32>
    %75 = arith.mulf %74, %73 : vector<8x128xf32>
    %76 = vector.extract_strided_slice %59 {offsets = [0, 256], sizes = [8, 128], strides = [1, 1]} : vector<8x512xf32> to vector<8x128xf32>
    %77 = math.tanh %76 : vector<8x128xf32>
    %78 = vector.extract_strided_slice %59 {offsets = [0, 384], sizes = [8, 128], strides = [1, 1]} : vector<8x512xf32> to vector<8x128xf32>
    %cst_40 = arith.constant 5.000000e-01 : f32
    %79 = vector.broadcast %cst_40 : f32 to vector<8x128xf32>
    %80 = arith.mulf %79, %78 : vector<8x128xf32>
    %81 = math.tanh %80 : vector<8x128xf32>
    %cst_41 = arith.constant 1.000000e+00 : f32
    %82 = vector.broadcast %cst_41 : f32 to vector<8x128xf32>
    %83 = arith.addf %81, %82 : vector<8x128xf32>
    %cst_42 = arith.constant 5.000000e-01 : f32
    %84 = vector.broadcast %cst_42 : f32 to vector<8x128xf32>
    %85 = arith.mulf %84, %83 : vector<8x128xf32>
    %86 = arith.mulf %75, %48 : vector<8x128xf32>
    %87 = arith.mulf %67, %77 : vector<8x128xf32>
    %88 = arith.addf %86, %87 : vector<8x128xf32>
    %89 = math.tanh %88 : vector<8x128xf32>
    %90 = arith.mulf %85, %89 : vector<8x128xf32>
    %91 = arith.index_cast %c1_i32 : i32 to index
    %c0_43 = arith.constant 0 : index
    %c0_44 = arith.constant 0 : index
    %92 = vector.load %arg8[%91, %c0_43, %c0_44] : memref<4x8x128xf32, #tpu.memory_space<vmem>>, vector<1x8x128xf32>
    %93 = vector.shape_cast %92 : vector<1x8x128xf32> to vector<8x128xf32>
    %94 = vector.shape_cast %90 : vector<8x128xf32> to vector<1x8x128xf32>
    tpu.vector_store %arg8[%91, %c0_43, %c0_44], %94 {strides = array<i32>} : memref<4x8x128xf32, #tpu.memory_space<vmem>>, vector<1x8x128xf32>,
    %c2_i32 = arith.constant 2 : i32
    %95 = arith.index_cast %c2_i32 : i32 to index
    %c0_45 = arith.constant 0 : index
    %c0_46 = arith.constant 0 : index
    %96 = vector.load %arg10[%95, %c0_45, %c0_46] : memref<4x8x512xf32, #tpu.memory_space<vmem>>, vector<1x8x512xf32>
    %97 = vector.shape_cast %96 : vector<1x8x512xf32> to vector<8x512xf32>
    %cst_47 = arith.constant dense<0.000000e+00> : vector<8x512xf32>
    %98 = tpu.matmul %90, %12, %cst_47 {dimension_numbers = #tpu.dot_dimension_numbers<[1], [0], [0], [1], [0, 0, 1, 1], [], []>} : vector<8x128xf32>, vector<128x512xf32>, vector<8x512xf32> -> vector<8x512xf32>
    %99 = arith.addf %97, %98 : vector<8x512xf32>
    %100 = vector.extract_strided_slice %99 {offsets = [0, 0], sizes = [8, 128], strides = [1, 1]} : vector<8x512xf32> to vector<8x128xf32>
    %cst_48 = arith.constant 5.000000e-01 : f32
    %101 = vector.broadcast %cst_48 : f32 to vector<8x128xf32>
    %102 = arith.mulf %101, %100 : vector<8x128xf32>
    %103 = math.tanh %102 : vector<8x128xf32>
    %cst_49 = arith.constant 1.000000e+00 : f32
    %104 = vector.broadcast %cst_49 : f32 to vector<8x128xf32>
    %105 = arith.addf %103, %104 : vector<8x128xf32>
    %cst_50 = arith.constant 5.000000e-01 : f32
    %106 = vector.broadcast %cst_50 : f32 to vector<8x128xf32>
    %107 = arith.mulf %106, %105 : vector<8x128xf32>
    %108 = vector.extract_strided_slice %99 {offsets = [0, 128], sizes = [8, 128], strides = [1, 1]} : vector<8x512xf32> to vector<8x128xf32>
    %cst_51 = arith.constant 5.000000e-01 : f32
    %109 = vector.broadcast %cst_51 : f32 to vector<8x128xf32>
    %110 = arith.mulf %109, %108 : vector<8x128xf32>
    %111 = math.tanh %110 : vector<8x128xf32>
    %cst_52 = arith.constant 1.000000e+00 : f32
    %112 = vector.broadcast %cst_52 : f32 to vector<8x128xf32>
    %113 = arith.addf %111, %112 : vector<8x128xf32>
    %cst_53 = arith.constant 5.000000e-01 : f32
    %114 = vector.broadcast %cst_53 : f32 to vector<8x128xf32>
    %115 = arith.mulf %114, %113 : vector<8x128xf32>
    %116 = vector.extract_strided_slice %99 {offsets = [0, 256], sizes = [8, 128], strides = [1, 1]} : vector<8x512xf32> to vector<8x128xf32>
    %117 = math.tanh %116 : vector<8x128xf32>
    %118 = vector.extract_strided_slice %99 {offsets = [0, 384], sizes = [8, 128], strides = [1, 1]} : vector<8x512xf32> to vector<8x128xf32>
    %cst_54 = arith.constant 5.000000e-01 : f32
    %119 = vector.broadcast %cst_54 : f32 to vector<8x128xf32>
    %120 = arith.mulf %119, %118 : vector<8x128xf32>
    %121 = math.tanh %120 : vector<8x128xf32>
    %cst_55 = arith.constant 1.000000e+00 : f32
    %122 = vector.broadcast %cst_55 : f32 to vector<8x128xf32>
    %123 = arith.addf %121, %122 : vector<8x128xf32>
    %cst_56 = arith.constant 5.000000e-01 : f32
    %124 = vector.broadcast %cst_56 : f32 to vector<8x128xf32>
    %125 = arith.mulf %124, %123 : vector<8x128xf32>
    %126 = arith.mulf %115, %88 : vector<8x128xf32>
    %127 = arith.mulf %107, %117 : vector<8x128xf32>
    %128 = arith.addf %126, %127 : vector<8x128xf32>
    %129 = math.tanh %128 : vector<8x128xf32>
    %130 = arith.mulf %125, %129 : vector<8x128xf32>
    %131 = arith.index_cast %c2_i32 : i32 to index
    %c0_57 = arith.constant 0 : index
    %c0_58 = arith.constant 0 : index
    %132 = vector.load %arg8[%131, %c0_57, %c0_58] : memref<4x8x128xf32, #tpu.memory_space<vmem>>, vector<1x8x128xf32>
    %133 = vector.shape_cast %132 : vector<1x8x128xf32> to vector<8x128xf32>
    %134 = vector.shape_cast %130 : vector<8x128xf32> to vector<1x8x128xf32>
    tpu.vector_store %arg8[%131, %c0_57, %c0_58], %134 {strides = array<i32>} : memref<4x8x128xf32, #tpu.memory_space<vmem>>, vector<1x8x128xf32>,
    %c3_i32 = arith.constant 3 : i32
    %135 = arith.index_cast %c3_i32 : i32 to index
    %c0_59 = arith.constant 0 : index
    %c0_60 = arith.constant 0 : index
    %136 = vector.load %arg10[%135, %c0_59, %c0_60] : memref<4x8x512xf32, #tpu.memory_space<vmem>>, vector<1x8x512xf32>
    %137 = vector.shape_cast %136 : vector<1x8x512xf32> to vector<8x512xf32>
    %cst_61 = arith.constant dense<0.000000e+00> : vector<8x512xf32>
    %138 = tpu.matmul %130, %12, %cst_61 {dimension_numbers = #tpu.dot_dimension_numbers<[1], [0], [0], [1], [0, 0, 1, 1], [], []>} : vector<8x128xf32>, vector<128x512xf32>, vector<8x512xf32> -> vector<8x512xf32>
    %139 = arith.addf %137, %138 : vector<8x512xf32>
    %140 = vector.extract_strided_slice %139 {offsets = [0, 0], sizes = [8, 128], strides = [1, 1]} : vector<8x512xf32> to vector<8x128xf32>
    %cst_62 = arith.constant 5.000000e-01 : f32
    %141 = vector.broadcast %cst_62 : f32 to vector<8x128xf32>
    %142 = arith.mulf %141, %140 : vector<8x128xf32>
    %143 = math.tanh %142 : vector<8x128xf32>
    %cst_63 = arith.constant 1.000000e+00 : f32
    %144 = vector.broadcast %cst_63 : f32 to vector<8x128xf32>
    %145 = arith.addf %143, %144 : vector<8x128xf32>
    %cst_64 = arith.constant 5.000000e-01 : f32
    %146 = vector.broadcast %cst_64 : f32 to vector<8x128xf32>
    %147 = arith.mulf %146, %145 : vector<8x128xf32>
    %148 = vector.extract_strided_slice %139 {offsets = [0, 128], sizes = [8, 128], strides = [1, 1]} : vector<8x512xf32> to vector<8x128xf32>
    %cst_65 = arith.constant 5.000000e-01 : f32
    %149 = vector.broadcast %cst_65 : f32 to vector<8x128xf32>
    %150 = arith.mulf %149, %148 : vector<8x128xf32>
    %151 = math.tanh %150 : vector<8x128xf32>
    %cst_66 = arith.constant 1.000000e+00 : f32
    %152 = vector.broadcast %cst_66 : f32 to vector<8x128xf32>
    %153 = arith.addf %151, %152 : vector<8x128xf32>
    %cst_67 = arith.constant 5.000000e-01 : f32
    %154 = vector.broadcast %cst_67 : f32 to vector<8x128xf32>
    %155 = arith.mulf %154, %153 : vector<8x128xf32>
    %156 = vector.extract_strided_slice %139 {offsets = [0, 256], sizes = [8, 128], strides = [1, 1]} : vector<8x512xf32> to vector<8x128xf32>
    %157 = math.tanh %156 : vector<8x128xf32>
    %158 = vector.extract_strided_slice %139 {offsets = [0, 384], sizes = [8, 128], strides = [1, 1]} : vector<8x512xf32> to vector<8x128xf32>
    %cst_68 = arith.constant 5.000000e-01 : f32
    %159 = vector.broadcast %cst_68 : f32 to vector<8x128xf32>
    %160 = arith.mulf %159, %158 : vector<8x128xf32>
    %161 = math.tanh %160 : vector<8x128xf32>
    %cst_69 = arith.constant 1.000000e+00 : f32
    %162 = vector.broadcast %cst_69 : f32 to vector<8x128xf32>
    %163 = arith.addf %161, %162 : vector<8x128xf32>
    %cst_70 = arith.constant 5.000000e-01 : f32
    %164 = vector.broadcast %cst_70 : f32 to vector<8x128xf32>
    %165 = arith.mulf %164, %163 : vector<8x128xf32>
    %166 = arith.mulf %155, %128 : vector<8x128xf32>
    %167 = arith.mulf %147, %157 : vector<8x128xf32>
    %168 = arith.addf %166, %167 : vector<8x128xf32>
    %169 = math.tanh %168 : vector<8x128xf32>
    %170 = arith.mulf %165, %169 : vector<8x128xf32>
    %171 = arith.index_cast %c3_i32 : i32 to index
    %c0_71 = arith.constant 0 : index
    %c0_72 = arith.constant 0 : index
    %172 = vector.load %arg8[%171, %c0_71, %c0_72] : memref<4x8x128xf32, #tpu.memory_space<vmem>>, vector<1x8x128xf32>
    %173 = vector.shape_cast %172 : vector<1x8x128xf32> to vector<8x128xf32>
    %174 = vector.shape_cast %170 : vector<8x128xf32> to vector<1x8x128xf32>
    tpu.vector_store %arg8[%171, %c0_71, %c0_72], %174 {strides = array<i32>} : memref<4x8x128xf32, #tpu.memory_space<vmem>>, vector<1x8x128xf32>,
    %c4_i32 = arith.constant 4 : i32
    %c0_73 = arith.constant 0 : index
    %c0_74 = arith.constant 0 : index
    %175 = vector.load %arg11[%c0_73, %c0_74] : memref<8x128xf32, #tpu.memory_space<vmem>>, vector<8x128xf32>
    tpu.vector_store %arg11[%c0_73, %c0_74], %170 {strides = array<i32>} : memref<8x128xf32, #tpu.memory_space<vmem>>, vector<8x128xf32>,
    %c0_75 = arith.constant 0 : index
    %c0_76 = arith.constant 0 : index
    %176 = vector.load %arg12[%c0_75, %c0_76] : memref<8x128xf32, #tpu.memory_space<vmem>>, vector<8x128xf32>
    tpu.vector_store %arg12[%c0_75, %c0_76], %168 {strides = array<i32>} : memref<8x128xf32, #tpu.memory_space<vmem>>, vector<8x128xf32>,
    %c1_i32_77 = arith.constant 1 : i32
    %177 = arith.cmpi eq, %arg1, %c1_i32_77 : i32
    %178 = arith.extui %177 : i1 to i32
    %c0_i32_78 = arith.constant 0 : i32
    %179 = arith.cmpi ne, %178, %c0_i32_78 : i32
    scf.if %179 {
      %c0_79 = arith.constant 0 : index
      %c0_80 = arith.constant 0 : index
      %180 = vector.load %arg9[%c0_79, %c0_80] : memref<8x128xf32, #tpu.memory_space<vmem>>, vector<8x128xf32>
      tpu.vector_store %arg9[%c0_79, %c0_80], %168 {strides = array<i32>} : memref<8x128xf32, #tpu.memory_space<vmem>>, vector<8x128xf32>,
    } else {
    }
    return
  }
  func.func @transform_0(%arg0: i32, %arg1: i32) -> (i32, i32, i32) {
    %c0_i32 = arith.constant 0 : i32
    %c0_i32_0 = arith.constant 0 : i32
    return %arg1, %arg0, %c0_i32 : i32, i32, i32
  }
  func.func @transform_1(%arg0: i32, %arg1: i32) -> (i32, i32) {
    %c0_i32 = arith.constant 0 : i32
    %c0_i32_0 = arith.constant 0 : i32
    %c0_i32_1 = arith.constant 0 : i32
    return %c0_i32, %c0_i32_0 : i32, i32
  }
  func.func @transform_2(%arg0: i32, %arg1: i32) -> (i32, i32) {
    %c0_i32 = arith.constant 0 : i32
    %c0_i32_0 = arith.constant 0 : i32
    %c0_i32_1 = arith.constant 0 : i32
    return %c0_i32, %c0_i32_0 : i32, i32
  }
  func.func @transform_3(%arg0: i32, %arg1: i32) -> (i32, i32) {
    %c0_i32 = arith.constant 0 : i32
    %c0_i32_0 = arith.constant 0 : i32
    %c0_i32_1 = arith.constant 0 : i32
    return %c0_i32, %c0_i32_0 : i32, i32
  }
  func.func @transform_4(%arg0: i32, %arg1: i32) -> (i32, i32) {
    %c0_i32 = arith.constant 0 : i32
    %c0_i32_0 = arith.constant 0 : i32
    return %arg0, %c0_i32 : i32, i32
  }
  func.func @transform_5(%arg0: i32, %arg1: i32) -> (i32, i32) {
    %c0_i32 = arith.constant 0 : i32
    %c0_i32_0 = arith.constant 0 : i32
    return %arg0, %c0_i32 : i32, i32
  }
  func.func @transform_6(%arg0: i32, %arg1: i32) -> (i32, i32, i32) {
    %c0_i32 = arith.constant 0 : i32
    %c0_i32_0 = arith.constant 0 : i32
    return %arg1, %arg0, %c0_i32 : i32, i32, i32
  }
  func.func @transform_7(%arg0: i32, %arg1: i32) -> (i32, i32) {
    %c0_i32 = arith.constant 0 : i32
    %c0_i32_0 = arith.constant 0 : i32
    return %arg0, %c0_i32 : i32, i32
  }
}

module attributes {stable_mosaic.version = 11 : i64} {
  func.func @_matmul_bias_kernel(%arg0: i32, %arg1: i32, %arg2: i32, %arg3: memref<64x128xf32, #tpu.memory_space<vmem>>, %arg4: memref<128x128xf32, #tpu.memory_space<vmem>>, %arg5: memref<1x128xf32, #tpu.memory_space<vmem>>, %arg6: memref<64x128xf32, #tpu.memory_space<vmem>>, %arg7: memref<64x128xf32, #tpu.memory_space<vmem>>) attributes {dimension_semantics = [#tpu.dimension_semantics<parallel>, #tpu.dimension_semantics<parallel>, #tpu.dimension_semantics<arbitrary>], iteration_bounds = array<i64: 1, 1, 1>, scalar_prefetch = 0 : i64, scratch_operands = 1 : i64, tpu.core_type = #tpu.core_type<tc>, window_params = [{transform_indices = @transform_0, window_bounds = array<i64: 64, 128>}, {transform_indices = @transform_1, window_bounds = array<i64: 128, 128>}, {transform_indices = @transform_2, window_bounds = array<i64: 1, 128>}, {transform_indices = @transform_3, window_bounds = array<i64: 64, 128>}]} {
    %c0_i32 = arith.constant 0 : i32
    %0 = arith.cmpi eq, %arg2, %c0_i32 : i32
    %1 = arith.extui %0 : i1 to i32
    %c0_i32_0 = arith.constant 0 : i32
    %2 = arith.cmpi ne, %1, %c0_i32_0 : i32
    scf.if %2 {
      %cst_10 = arith.constant 0.000000e+00 : f32
      %12 = vector.broadcast %cst_10 : f32 to vector<64x128xf32>
      %c0_11 = arith.constant 0 : index
      %c0_12 = arith.constant 0 : index
      %13 = vector.load %arg7[%c0_11, %c0_12] : memref<64x128xf32, #tpu.memory_space<vmem>>, vector<64x128xf32>
      tpu.vector_store %arg7[%c0_11, %c0_12], %12 {strides = array<i32>} : memref<64x128xf32, #tpu.memory_space<vmem>>, vector<64x128xf32>,
    } else {
    }
    %c0 = arith.constant 0 : index
    %c0_1 = arith.constant 0 : index
    %3 = vector.load %arg7[%c0, %c0_1] : memref<64x128xf32, #tpu.memory_space<vmem>>, vector<64x128xf32>
    %c0_2 = arith.constant 0 : index
    %c0_3 = arith.constant 0 : index
    %4 = vector.load %arg3[%c0_2, %c0_3] : memref<64x128xf32, #tpu.memory_space<vmem>>, vector<64x128xf32>
    %c0_4 = arith.constant 0 : index
    %c0_5 = arith.constant 0 : index
    %5 = vector.load %arg4[%c0_4, %c0_5] : memref<128x128xf32, #tpu.memory_space<vmem>>, vector<128x128xf32>
    %cst = arith.constant dense<0.000000e+00> : vector<64x128xf32>
    %6 = tpu.matmul %4, %5, %cst {dimension_numbers = #tpu.dot_dimension_numbers<[1], [0], [0], [1], [0, 0, 1, 1], [], []>} : vector<64x128xf32>, vector<128x128xf32>, vector<64x128xf32> -> vector<64x128xf32>
    %7 = arith.addf %3, %6 : vector<64x128xf32>
    %c0_6 = arith.constant 0 : index
    %c0_7 = arith.constant 0 : index
    %8 = vector.load %arg7[%c0_6, %c0_7] : memref<64x128xf32, #tpu.memory_space<vmem>>, vector<64x128xf32>
    tpu.vector_store %arg7[%c0_6, %c0_7], %7 {strides = array<i32>} : memref<64x128xf32, #tpu.memory_space<vmem>>, vector<64x128xf32>,
    %c0_i32_8 = arith.constant 0 : i32
    %9 = arith.cmpi eq, %arg2, %c0_i32_8 : i32
    %10 = arith.extui %9 : i1 to i32
    %c0_i32_9 = arith.constant 0 : i32
    %11 = arith.cmpi ne, %10, %c0_i32_9 : i32
    scf.if %11 {
      %c0_10 = arith.constant 0 : index
      %c0_11 = arith.constant 0 : index
      %12 = vector.load %arg7[%c0_10, %c0_11] : memref<64x128xf32, #tpu.memory_space<vmem>>, vector<64x128xf32>
      %c0_12 = arith.constant 0 : index
      %c0_13 = arith.constant 0 : index
      %13 = vector.load %arg5[%c0_12, %c0_13] : memref<1x128xf32, #tpu.memory_space<vmem>>, vector<1x128xf32>
      %14 = vector.broadcast %13 : vector<1x128xf32> to vector<64x128xf32>
      %15 = arith.addf %12, %14 : vector<64x128xf32>
      %c0_14 = arith.constant 0 : index
      %c0_15 = arith.constant 0 : index
      %16 = vector.load %arg6[%c0_14, %c0_15] : memref<64x128xf32, #tpu.memory_space<vmem>>, vector<64x128xf32>
      tpu.vector_store %arg6[%c0_14, %c0_15], %15 {strides = array<i32>} : memref<64x128xf32, #tpu.memory_space<vmem>>, vector<64x128xf32>,
    } else {
    }
    return
  }
  func.func @transform_0(%arg0: i32, %arg1: i32, %arg2: i32) -> (i32, i32) {
    %c0_i32 = arith.constant 0 : i32
    return %arg0, %arg2 : i32, i32
  }
  func.func @transform_1(%arg0: i32, %arg1: i32, %arg2: i32) -> (i32, i32) {
    %c0_i32 = arith.constant 0 : i32
    return %arg2, %arg1 : i32, i32
  }
  func.func @transform_2(%arg0: i32, %arg1: i32, %arg2: i32) -> (i32, i32) {
    %c0_i32 = arith.constant 0 : i32
    %c0_i32_0 = arith.constant 0 : i32
    return %c0_i32, %arg1 : i32, i32
  }
  func.func @transform_3(%arg0: i32, %arg1: i32, %arg2: i32) -> (i32, i32) {
    %c0_i32 = arith.constant 0 : i32
    return %arg0, %arg1 : i32, i32
  }
}

</mosaic_0001>

<bundles_post_ra>
// kernel: lstm_model_forward.5
= control target key start
LH: loop header
LB: loop body
LE: loop exit
PB: predicated region body
PF: predicated region fallthrough
CT: control target
= control target key end

     0   :  { %s453_s1 = inlined_call_operand.vmem [shape: f32[128,128], index: 1, kind: input, shape index: {}]   ;;  %s454_s0 = inlined_call_operand.vmem [shape: f32[64,128], index: 0, kind: input, shape index: {}]   ;;  %s455_s2 = inlined_call_operand.vmem [shape: f32[1,128], index: 2, kind: input, shape index: {}]   ;;  %s456_s3 = inlined_call_operand.vmem [shape: f32[64,128], index: 3, kind: output, shape index: {}]  }
   0x1   :  { %v42_v0 = vld [vmem:[%s453_s1] sm:$0xff]  ;;  %v43_v1 = vld [vmem:[%s453_s1 + $0x8] sm:$0xff]  ;;  %v44_v2 = vld [vmem:[%s453_s1 + $0x10] sm:$0xff] }
   0x2   :  { %v286_v3 = vpack.c.bf16 %v43_v1, %v42_v0  ;;  %v45_v4 = vld [vmem:[%s453_s1 + $0x18] sm:$0xff]  ;;  %v46_v6 = vld [vmem:[%s453_s1 + $0x20] sm:$0xff]  ;;  %v47_v7 = vld [vmem:[%s453_s1 + $0x28] sm:$0xff] }
   0x3   :  { %v290_v5 = vpack.c.bf16 %v45_v4, %v44_v2  ;;  %v294_v8 = vpack.c.bf16 %v47_v7, %v46_v6  ;;  %v34_v9 = vld [vmem:[%s454_s0] sm:$0xff]  ;;  %v48_v11 = vld [vmem:[%s453_s1 + $0x30] sm:$0xff]  ;;  %v49_v12 = vld [vmem:[%s453_s1 + $0x38] sm:$0xff] }
   0x4   :  { %287 = vmatprep.subr.bf16.mxu0 %v286_v3  ;;  %318 = vmatprep.subr.bf16.mxu1 %v286_v3  ;;  %v38_v10 = vld [vmem:[%s454_s0 + $0x20] sm:$0xff]  ;;  %v298_v13 = vpack.c.bf16 %v49_v12, %v48_v11  ;;  %v51_v15 = vld [vmem:[%s453_s1 + $0x48] sm:$0xff]  ;;  %v52_v17 = vld [vmem:[%s453_s1 + $0x50] sm:$0xff] }
   0x5   :  { %289 = vmatpush3.bf16.msra.mxu0 %v286_v3  ;;  %326 = vmatpush3.bf16.msra.mxu1 %v286_v3  ;;  %v50_v14 = vld [vmem:[%s453_s1 + $0x40] sm:$0xff]  ;;  %v53_v18 = vld [vmem:[%s453_s1 + $0x58] sm:$0xff]  ;;  %v55_v21 = vld [vmem:[%s453_s1 + $0x68] sm:$0xff] }
   0x6   :  { %291 = vmatprep.subr.bf16.mxu0 %v290_v5  ;;  %319 = vmatprep.subr.bf16.mxu1 %v290_v5  ;;  %v302_v16 = vpack.c.bf16 %v51_v15, %v50_v14  ;;  %v306_v19 = vpack.c.bf16 %v53_v18, %v52_v17  ;;  %v54_v20 = vld [vmem:[%s453_s1 + $0x60] sm:$0xff]  ;;  %v56_v23 = vld [vmem:[%s453_s1 + $0x70] sm:$0xff]  ;;  %v57_v24 = vld [vmem:[%s453_s1 + $0x78] sm:$0xff] }
   0x7   :  { %274 = vmatprep.mubr.f32.mxu0 %v34_v9  ;;  %280 = vmatprep.mubr.f32.mxu1 %v38_v10  ;;  %v310_v22 = vpack.c.bf16 %v55_v21, %v54_v20  ;;  %v314_v25 = vpack.c.bf16 %v57_v24, %v56_v23  ;;  %v35_v26 = vld [vmem:[%s454_s0 + $0x8] sm:$0xff]  ;;  %v36_v28 = vld [vmem:[%s454_s0 + $0x10] sm:$0xff]  ;;  %v37_v30 = vld [vmem:[%s454_s0 + $0x18] sm:$0xff] }
   0x8   :  { %v39_v27 = vld [vmem:[%s454_s0 + $0x28] sm:$0xff]  ;;  %v40_v29 = vld [vmem:[%s454_s0 + $0x30] sm:$0xff]  ;;  %v41_v31 = vld [vmem:[%s454_s0 + $0x38] sm:$0xff] }
   0x9   :  { %293 = vmatpush3.bf16.msra.mxu0 %v290_v5  ;;  %327 = vmatpush3.bf16.msra.mxu1 %v290_v5  ;;  %v217_v32 = vld [vmem:[%s455_s2] ss:$0 sm:$0xff] }
   0xa   :  { %295 = vmatprep.subr.bf16.mxu0 %v294_v8  ;;  %320 = vmatprep.subr.bf16.mxu1 %v294_v8 }
   0xd   :  { %297 = vmatpush3.bf16.msra.mxu0 %v294_v8  ;;  %328 = vmatpush3.bf16.msra.mxu1 %v294_v8 }
   0xe   :  { %299 = vmatprep.subr.bf16.mxu0 %v298_v13  ;;  %321 = vmatprep.subr.bf16.mxu1 %v298_v13 }
  0x11   :  { %301 = vmatpush3.bf16.msra.mxu0 %v298_v13  ;;  %329 = vmatpush3.bf16.msra.mxu1 %v298_v13 }
  0x12   :  { %303 = vmatprep.subr.bf16.mxu0 %v302_v16  ;;  %322 = vmatprep.subr.bf16.mxu1 %v302_v16 }
  0x15   :  { %305 = vmatpush3.bf16.msra.mxu0 %v302_v16  ;;  %330 = vmatpush3.bf16.msra.mxu1 %v302_v16 }
  0x16   :  { %307 = vmatprep.subr.bf16.mxu0 %v306_v19  ;;  %323 = vmatprep.subr.bf16.mxu1 %v306_v19 }
  0x19   :  { %309 = vmatpush3.bf16.msra.mxu0 %v306_v19  ;;  %331 = vmatpush3.bf16.msra.mxu1 %v306_v19 }
  0x1a   :  { %311 = vmatprep.subr.bf16.mxu0 %v310_v22  ;;  %324 = vmatprep.subr.bf16.mxu1 %v310_v22 }
  0x1d   :  { %313 = vmatpush3.bf16.msra.mxu0 %v310_v22  ;;  %332 = vmatpush3.bf16.msra.mxu1 %v310_v22 }
  0x1e   :  { %315 = vmatprep.subr.bf16.mxu0 %v314_v25  ;;  %325 = vmatprep.subr.bf16.mxu1 %v314_v25 }
  0x21   :  { %317 = vmatpush3.bf16.msra.mxu0 %v314_v25  ;;  %333 = vmatpush3.bf16.msra.mxu1 %v314_v25 }
  0x24   :  { %275 = vmatmul.mubr.f32.vlgmr.msra.gmra.mrb[0].mxu0 %v35_v26  ;;  %281 = vmatmul.mubr.f32.vlgmr.msra.gmra.mrb[0].mxu1 %v39_v27 }
  0x25   :  { %277 = vmatprep.mubr.f32.mxu0 %v36_v28  ;;  %283 = vmatprep.mubr.f32.mxu1 %v40_v29 }
  0x28   :  { %278 = vmatmul.mubr.f32.gmra.mrb[2].mxu0 %v37_v30  ;;  %284 = vmatmul.mubr.f32.gmra.mrb[2].mxu1 %v41_v31 }
  0xf7   :  { %v276_v33 = vpop.f32.mrb[0].mxu0  ;;  %v282_v34 = vpop.f32.mrb[0].mxu1 }
  0xf8   :  { %v198_v35 = vadd.f32 %v276_v33, %v217_v32  ;;  %v202_v36 = vadd.f32 %v282_v34, %v217_v32  ;;  %v124_v37 = vpop.f32.mrb[1].mxu0  ;;  %v144_v38 = vpop.f32.mrb[1].mxu1 }
  0xf9   :  { %v197_v39 = vadd.f32 %v217_v32, %v124_v37  ;;  %v201_v40 = vadd.f32 %v217_v32, %v144_v38 }
  0xfa   :  { %206 = vst [vmem:[%s456_s3 + $0x8] sm:$0xff] %v198_v35  ;;  %210 = vst [vmem:[%s456_s3 + $0x28] sm:$0xff] %v202_v36 }
  0xfb   :  { %205 = vst [vmem:[%s456_s3] sm:$0xff] %v197_v39  ;;  %209 = vst [vmem:[%s456_s3 + $0x20] sm:$0xff] %v201_v40  ;;  %v279_v41 = vpop.f32.mrb[2].mxu0  ;;  %v285_v42 = vpop.f32.mrb[2].mxu1 }
  0xfc   :  { %v200_v43 = vadd.f32 %v279_v41, %v217_v32  ;;  %v204_v44 = vadd.f32 %v285_v42, %v217_v32  ;;  %v134_v45 = vpop.f32.mrb[3].mxu0  ;;  %v154_v46 = vpop.f32.mrb[3].mxu1 }
  0xfd   :  { %v199_v47 = vadd.f32 %v217_v32, %v134_v45  ;;  %v203_v48 = vadd.f32 %v217_v32, %v154_v46 }
  0xfe   :  { %208 = vst [vmem:[%s456_s3 + $0x18] sm:$0xff] %v200_v43  ;;  %212 = vst [vmem:[%s456_s3 + $0x38] sm:$0xff] %v204_v44 }
  0xff   :  { %207 = vst [vmem:[%s456_s3 + $0x10] sm:$0xff] %v199_v47  ;;  %211 = vst [vmem:[%s456_s3 + $0x30] sm:$0xff] %v203_v48 }

// kernel: lstm_model_forward.3
= control target key start
LH: loop header
LB: loop body
LE: loop exit
PB: predicated region body
PF: predicated region fallthrough
CT: control target
= control target key end

     0   :  { %s2042_s24 = smov 0   ;;  %s2044_s25 = smov 0   ;;  %s2728_s0 = inlined_call_operand.vmem [shape: f32[8,8,128], index: 0, kind: input, shape index: {}]   ;;  %s2729_s1 = inlined_call_operand.vmem [shape: f32[128,512], index: 1, kind: input, shape index: {}]   ;;  %s2730_s2 = inlined_call_operand.vmem [shape: f32[128,512], index: 2, kind: input, shape index: {}]   ;;  %s2731_s3 = inlined_call_operand.vmem [shape: f32[1,512], index: 3, kind: input, shape index: {}]   ;;  %s2732_s4 = inlined_call_operand.vmem [shape: f32[8,128], index: 4, kind: input, shape index: {}, may-alias: {4,5}]   ;;  %s2733_s5 = inlined_call_operand.vmem [shape: f32[8,128], index: 5, kind: input, shape index: {}, may-alias: {4,5}]   ;;  %s2734_s6 = inlined_call_operand.vmem [shape: f32[8,8,128], index: 6, kind: output, shape index: {0}]   ;;  %s2735_s7 = inlined_call_operand.vmem [shape: f32[8,128], index: 7, kind: output, shape index: {1}]  }
   0x1   :  { %s2046_s26 = smov 0  }
   0x2 LB: > { %s27_s27 = sadd.s32 1, %s1995_s25  ;;  %p1547_p0 = scmp.ge.s32.totalorder %s1999_s26, 1  ;;  %s1999_s26 = sphi %s2046_s26, %s18_s26   ;;  %s1995_s25 = sphi %s2044_s25, %s2737_s25   ;;  %s1991_s24 = sphi %s2042_s24, %s2736_s24  }
   0x3   : > { %p28_p1 = scmp.ge.s32.totalorder %s27_s27, 2  ;;  %p278_p2 = scmp.lt.s32.totalorder %s1999_s26, 3 }
   0x5   : > { %s2739_s27 = smov (%p28_p1, %s27_s27), 0  ;;  %p279_p3 = pnand %p1547_p0, %p278_p2 }
   0x6   : > { %s1548_s28 = sshll.u32 (!%p279_p3), %s1991_s24, 2  ;;  %p1552_p5 = scmp.ne.s32.totalorder (!%p279_p3), %s1991_s24, 0 }
   0x7   : > { %282 = sbr.rel (%p279_p3) target bundleno = 1086 (0x43e), region = 44  ;;  %p329_p4 = scmp.lt.s32.totalorder (!%p279_p3), %s1548_s28, 7 }
   0xe   : > { %s2741_s28 = smov (!%p329_p4, %s1548_s28), 7  ;;  %361 = sbr.rel (%p1552_p5) target bundleno = 21 (0x15), region = 48 }
   0xf   : > { %s1549_s29 = sshll.u32 %s2741_s28, 3  ;;  %v362_v0 = vld [vmem:[%s2732_s4] sm:$0xff] (!%p1552_p5) }
  0x10   : > { %s2066_s9 = scalar_lea.vmem %s2728_s0, %s1549_s29  ;;  %s2071_s12 = scalar_lea.vmem %s2734_s6, %s1549_s29  ;;  %v364_v1 = vld [vmem:[%s2733_s5] sm:$0xff] (!%p1552_p5)  ;;  %363 = vst [vmem:[#allocation3] sm:$0xff] (!%p1552_p5), %v362_v0 }
  0x11   : > { %365 = vst [vmem:[#allocation4] sm:$0xff] (!%p1552_p5), %v364_v1 }
  0x15 PF: > { %v371_v2 = vld [vmem:[%s2729_s1 + $0x8] sm:$0xff]  ;;  %v373_v4 = vld [vmem:[%s2729_s1 + $0x18] sm:$0xff]  ;;  %v370_v7 = vld [vmem:[%s2729_s1] sm:$0xff]  ;;  %v2001_v9 = vmov 0.0   ;;  %p1556_p6 = scmp.ne.s32.totalorder %s1991_s24, 1 }
  0x16   : > { %v375_v3 = vld [vmem:[%s2729_s1 + $0x28] sm:$0xff]  ;;  %v377_v6 = vld [vmem:[%s2729_s1 + $0x38] sm:$0xff]  ;;  %v374_v8 = vld [vmem:[%s2729_s1 + $0x20] sm:$0xff]  ;;  %520 = vmatprep.mubr.f32.mxu0 %v2001_v9  ;;  %609 = vmatprep.mubr.f32.mxu1 %v2001_v9 }
  0x17   : > { %v1560_v5 = vpack.c.bf16 %v375_v3, %v371_v2  ;;  %v1592_v10 = vpack.c.bf16 %v377_v6, %v373_v4  ;;  %v1562_v11 = vpack.c.bf16 %v374_v8, %v370_v7  ;;  %v372_v12 = vld [vmem:[%s2729_s1 + $0x10] sm:$0xff]  ;;  %v379_v14 = vld [vmem:[%s2729_s1 + $0x48] sm:$0xff]  ;;  %v381_v17 = vld [vmem:[%s2729_s1 + $0x58] sm:$0xff] }
  0x18   : > { %v376_v13 = vld [vmem:[%s2729_s1 + $0x30] sm:$0xff]  ;;  %v383_v16 = vld [vmem:[%s2729_s1 + $0x68] sm:$0xff]  ;;  %v385_v18 = vld [vmem:[%s2729_s1 + $0x78] sm:$0xff] }
  0x19   : > { %1561 = vmatprep.subr.bf16.mxu0 %v1560_v5  ;;  %v1594_v15 = vpack.c.bf16 %v376_v13, %v372_v12  ;;  %1593 = vmatprep.subr.bf16.mxu1 %v1592_v10  ;;  %v1564_v19 = vpack.c.bf16 %v383_v16, %v379_v14  ;;  %v1596_v20 = vpack.c.bf16 %v385_v18, %v381_v17  ;;  %v378_v21 = vld [vmem:[%s2729_s1 + $0x40] sm:$0xff]  ;;  %v380_v23 = vld [vmem:[%s2729_s1 + $0x50] sm:$0xff]  ;;  %v387_v26 = vld [vmem:[%s2729_s1 + $0x88] sm:$0xff] }
  0x1a   : > { %1563 = vmatpush1.bf16.msra.mxu0 %v1562_v11  ;;  %v382_v22 = vld [vmem:[%s2729_s1 + $0x60] sm:$0xff]  ;;  %v384_v25 = vld [vmem:[%s2729_s1 + $0x70] sm:$0xff]  ;;  %v391_v27 = vld [vmem:[%s2729_s1 + $0xa8] sm:$0xff] }
  0x1b   : > { %1595 = vmatpush1.bf16.msra.mxu1 %v1594_v15  ;;  %v1566_v24 = vpack.c.bf16 %v382_v22, %v378_v21  ;;  %1565 = vmatprep.subr.bf16.mxu0 %v1564_v19  ;;  %v1598_v28 = vpack.c.bf16 %v384_v25, %v380_v23  ;;  %v1568_v29 = vpack.c.bf16 %v391_v27, %v387_v26  ;;  %v389_v30 = vld [vmem:[%s2729_s1 + $0x98] sm:$0xff]  ;;  %v386_v32 = vld [vmem:[%s2729_s1 + $0x80] sm:$0xff]  ;;  %v388_v35 = vld [vmem:[%s2729_s1 + $0x90] sm:$0xff] }
  0x1c   : > { %1597 = vmatprep.subr.bf16.mxu1 %v1596_v20  ;;  %v393_v31 = vld [vmem:[%s2729_s1 + $0xb8] sm:$0xff]  ;;  %v390_v34 = vld [vmem:[%s2729_s1 + $0xa0] sm:$0xff]  ;;  %v392_v36 = vld [vmem:[%s2729_s1 + $0xb0] sm:$0xff] }
  0x1d   : > { %v1600_v33 = vpack.c.bf16 %v393_v31, %v389_v30  ;;  %v1570_v37 = vpack.c.bf16 %v390_v34, %v386_v32  ;;  %v395_v38 = vld [vmem:[%s2729_s1 + $0xc8] sm:$0xff]  ;;  %v397_v40 = vld [vmem:[%s2729_s1 + $0xd8] sm:$0xff]  ;;  %v1602_v41 = vpack.c.bf16 %v392_v36, %v388_v35  ;;  %v394_v44 = vld [vmem:[%s2729_s1 + $0xc0] sm:$0xff] }
  0x1e   : > { %1567 = vmatpush1.bf16.msra.mxu0 %v1566_v24  ;;  %v399_v39 = vld [vmem:[%s2729_s1 + $0xe8] sm:$0xff]  ;;  %v401_v43 = vld [vmem:[%s2729_s1 + $0xf8] sm:$0xff]  ;;  %v398_v45 = vld [vmem:[%s2729_s1 + $0xe0] sm:$0xff] }
  0x1f   : > { %1599 = vmatpush1.bf16.msra.mxu1 %v1598_v28  ;;  %1569 = vmatprep.subr.bf16.mxu0 %v1568_v29  ;;  %v1572_v42 = vpack.c.bf16 %v399_v39, %v395_v38  ;;  %v1604_v46 = vpack.c.bf16 %v401_v43, %v397_v40  ;;  %v396_v47 = vld [vmem:[%s2729_s1 + $0xd0] sm:$0xff]  ;;  %v403_v49 = vld [vmem:[%s2729_s1 + $0x108] sm:$0xff]  ;;  %v405_v51 = vld [vmem:[%s2729_s1 + $0x118] sm:$0xff]  ;;  %v1574_v53 = vpack.c.bf16 %v398_v45, %v394_v44 }
  0x20   : > { %1601 = vmatprep.subr.bf16.mxu1 %v1600_v33  ;;  %v400_v48 = vld [vmem:[%s2729_s1 + $0xf0] sm:$0xff]  ;;  %v407_v50 = vld [vmem:[%s2729_s1 + $0x128] sm:$0xff]  ;;  %v409_v52 = vld [vmem:[%s2729_s1 + $0x138] sm:$0xff] }
  0x21   : > { %v1606_v54 = vpack.c.bf16 %v400_v48, %v396_v47  ;;  %v1576_v55 = vpack.c.bf16 %v407_v50, %v403_v49  ;;  %v402_v56 = vld [vmem:[%s2729_s1 + $0x100] sm:$0xff]  ;;  %v404_v58 = vld [vmem:[%s2729_s1 + $0x110] sm:$0xff]  ;;  %v1608_v59 = vpack.c.bf16 %v409_v52, %v405_v51  ;;  %v411_v61 = vld [vmem:[%s2729_s1 + $0x148] sm:$0xff] }
  0x22   : > { %1571 = vmatpush1.bf16.msra.mxu0 %v1570_v37  ;;  %v406_v57 = vld [vmem:[%s2729_s1 + $0x120] sm:$0xff]  ;;  %v408_v60 = vld [vmem:[%s2729_s1 + $0x130] sm:$0xff]  ;;  %v415_v62 = vld [vmem:[%s2729_s1 + $0x168] sm:$0xff] }
  0x23   : > { %1603 = vmatpush1.bf16.msra.mxu1 %v1602_v41  ;;  %1573 = vmatprep.subr.bf16.mxu0 %v1572_v42  ;;  %v413_v63 = vld [vmem:[%s2729_s1 + $0x158] sm:$0xff]  ;;  %v1578_v1 = vpack.c.bf16 %v406_v57, %v402_v56  ;;  %v1610_v2 = vpack.c.bf16 %v408_v60, %v404_v58  ;;  %v1580_v3 = vpack.c.bf16 %v415_v62, %v411_v61  ;;  %v410_v4 = vld [vmem:[%s2729_s1 + $0x140] sm:$0xff]  ;;  %v412_v6 = vld [vmem:[%s2729_s1 + $0x150] sm:$0xff] }
  0x24   : > { %1605 = vmatprep.subr.bf16.mxu1 %v1604_v46  ;;  %v417_v0 = vld [vmem:[%s2729_s1 + $0x178] sm:$0xff]  ;;  %v414_v5 = vld [vmem:[%s2729_s1 + $0x160] sm:$0xff]  ;;  %v416_v8 = vld [vmem:[%s2729_s1 + $0x170] sm:$0xff] }
  0x25   : > { %v1612_v7 = vpack.c.bf16 %v417_v0, %v413_v63  ;;  %v419_v10 = vld [vmem:[%s2729_s1 + $0x188] sm:$0xff]  ;;  %v421_v12 = vld [vmem:[%s2729_s1 + $0x198] sm:$0xff]  ;;  %v1582_v14 = vpack.c.bf16 %v414_v5, %v410_v4  ;;  %v1614_v15 = vpack.c.bf16 %v416_v8, %v412_v6  ;;  %v418_v17 = vld [vmem:[%s2729_s1 + $0x180] sm:$0xff] }
  0x26   : > { %1575 = vmatpush1.bf16.msra.mxu0 %v1574_v53  ;;  %v423_v11 = vld [vmem:[%s2729_s1 + $0x1a8] sm:$0xff]  ;;  %v425_v13 = vld [vmem:[%s2729_s1 + $0x1b8] sm:$0xff]  ;;  %v422_v18 = vld [vmem:[%s2729_s1 + $0x1a0] sm:$0xff] }
  0x27   : > { %1607 = vmatpush1.bf16.msra.mxu1 %v1606_v54  ;;  %1577 = vmatprep.subr.bf16.mxu0 %v1576_v55  ;;  %v1584_v16 = vpack.c.bf16 %v423_v11, %v419_v10  ;;  %v420_v19 = vld [vmem:[%s2729_s1 + $0x190] sm:$0xff]  ;;  %v1616_v20 = vpack.c.bf16 %v425_v13, %v421_v12  ;;  %v427_v22 = vld [vmem:[%s2729_s1 + $0x1c8] sm:$0xff]  ;;  %v429_v24 = vld [vmem:[%s2729_s1 + $0x1d8] sm:$0xff]  ;;  %v1586_v26 = vpack.c.bf16 %v422_v18, %v418_v17 }
  0x28   : > { %1609 = vmatprep.subr.bf16.mxu1 %v1608_v59  ;;  %v424_v21 = vld [vmem:[%s2729_s1 + $0x1b0] sm:$0xff]  ;;  %v431_v23 = vld [vmem:[%s2729_s1 + $0x1e8] sm:$0xff]  ;;  %v433_v25 = vld [vmem:[%s2729_s1 + $0x1f8] sm:$0xff] }
  0x29   : > { %v1618_v27 = vpack.c.bf16 %v424_v21, %v420_v19  ;;  %v1588_v28 = vpack.c.bf16 %v431_v23, %v427_v22  ;;  %v426_v29 = vld [vmem:[%s2729_s1 + $0x1c0] sm:$0xff]  ;;  %v428_v31 = vld [vmem:[%s2729_s1 + $0x1d0] sm:$0xff]  ;;  %v1620_v32 = vpack.c.bf16 %v433_v25, %v429_v24  ;;  %v651_v34 = vld [vmem:[%s2730_s2 + $0x8] sm:$0xff] }
  0x2a   : > { %1579 = vmatpush1.bf16.msra.mxu0 %v1578_v1  ;;  %v430_v30 = vld [vmem:[%s2729_s1 + $0x1e0] sm:$0xff]  ;;  %v432_v33 = vld [vmem:[%s2729_s1 + $0x1f0] sm:$0xff]  ;;  %v655_v35 = vld [vmem:[%s2730_s2 + $0x28] sm:$0xff] }
  0x2b   : > { %1611 = vmatpush1.bf16.msra.mxu1 %v1610_v2  ;;  %1581 = vmatprep.subr.bf16.mxu0 %v1580_v3  ;;  %v653_v36 = vld [vmem:[%s2730_s2 + $0x18] sm:$0xff]  ;;  %v1590_v38 = vpack.c.bf16 %v430_v30, %v426_v29  ;;  %v1622_v39 = vpack.c.bf16 %v432_v33, %v428_v31  ;;  %v2286_v40 = vpack.c.bf16 %v655_v35, %v651_v34  ;;  %v650_v41 = vld [vmem:[%s2730_s2] sm:$0xff]  ;;  %v652_v43 = vld [vmem:[%s2730_s2 + $0x10] sm:$0xff] }
  0x2c   : > { %1613 = vmatprep.subr.bf16.mxu1 %v1612_v7  ;;  %v657_v37 = vld [vmem:[%s2730_s2 + $0x38] sm:$0xff]  ;;  %v654_v42 = vld [vmem:[%s2730_s2 + $0x20] sm:$0xff]  ;;  %v656_v45 = vld [vmem:[%s2730_s2 + $0x30] sm:$0xff] }
  0x2d   : > { %v2297_v44 = vpack.c.bf16 %v657_v37, %v653_v36  ;;  %v659_v46 = vld [vmem:[%s2730_s2 + $0x48] sm:$0xff]  ;;  %v661_v48 = vld [vmem:[%s2730_s2 + $0x58] sm:$0xff]  ;;  %v366_v50 = vld [vmem:[%s2066_s9] sm:$0xff]  ;;  %v2315_v51 = vpack.c.bf16 %v654_v42, %v650_v41  ;;  %v2318_v52 = vpack.c.bf16 %v656_v45, %v652_v43 }
  0x2e   : > { %1583 = vmatpush1.bf16.msra.mxu0 %v1582_v14  ;;  %v663_v47 = vld [vmem:[%s2730_s2 + $0x68] sm:$0xff]  ;;  %v665_v49 = vld [vmem:[%s2730_s2 + $0x78] sm:$0xff]  ;;  %v658_v54 = vld [vmem:[%s2730_s2 + $0x40] sm:$0xff] }
  0x2f   : > { %1615 = vmatpush1.bf16.msra.mxu1 %v1614_v15  ;;  %1585 = vmatprep.subr.bf16.mxu0 %v1584_v16  ;;  %v2320_v53 = vpack.c.bf16 %v663_v47, %v659_v46  ;;  %v662_v55 = vld [vmem:[%s2730_s2 + $0x60] sm:$0xff]  ;;  %v660_v56 = vld [vmem:[%s2730_s2 + $0x50] sm:$0xff]  ;;  %v2332_v57 = vpack.c.bf16 %v665_v49, %v661_v48  ;;  %v667_v59 = vld [vmem:[%s2730_s2 + $0x88] sm:$0xff] }
  0x30   : > { %1617 = vmatprep.subr.bf16.mxu1 %v1616_v20  ;;  %v664_v58 = vld [vmem:[%s2730_s2 + $0x70] sm:$0xff]  ;;  %v671_v60 = vld [vmem:[%s2730_s2 + $0xa8] sm:$0xff]  ;;  %v669_v61 = vld [vmem:[%s2730_s2 + $0x98] sm:$0xff]  ;;  %v2350_v63 = vpack.c.bf16 %v662_v55, %v658_v54 }
  0x31   : > { %v673_v62 = vld [vmem:[%s2730_s2 + $0xb8] sm:$0xff]  ;;  %v367_v0 = vld [vmem:[%s2066_s9 + $0x8] sm:$0xff]  ;;  %v2355_v1 = vpack.c.bf16 %v664_v58, %v660_v56  ;;  %v2357_v2 = vpack.c.bf16 %v671_v60, %v667_v59  ;;  %v666_v3 = vld [vmem:[%s2730_s2 + $0x80] sm:$0xff] }
  0x32   : > { %1587 = vmatpush1.bf16.msra.mxu0 %v1586_v26  ;;  %v670_v4 = vld [vmem:[%s2730_s2 + $0xa0] sm:$0xff]  ;;  %v668_v5 = vld [vmem:[%s2730_s2 + $0x90] sm:$0xff]  ;;  %v2369_v6 = vpack.c.bf16 %v673_v62, %v669_v61  ;;  %v675_v8 = vld [vmem:[%s2730_s2 + $0xc8] sm:$0xff] }
  0x33   : > { %1619 = vmatpush1.bf16.msra.mxu1 %v1618_v27  ;;  %1589 = vmatprep.subr.bf16.mxu0 %v1588_v28  ;;  %v672_v7 = vld [vmem:[%s2730_s2 + $0xb0] sm:$0xff]  ;;  %v679_v10 = vld [vmem:[%s2730_s2 + $0xe8] sm:$0xff]  ;;  %v677_v11 = vld [vmem:[%s2730_s2 + $0xd8] sm:$0xff]  ;;  %v2389_v13 = vpack.c.bf16 %v670_v4, %v666_v3 }
  0x34   : > { %1621 = vmatprep.subr.bf16.mxu1 %v1620_v32  ;;  %v681_v12 = vld [vmem:[%s2730_s2 + $0xf8] sm:$0xff]  ;;  %v368_v14 = vld [vmem:[%s2066_s9 + $0x10] sm:$0xff]  ;;  %v2394_v15 = vpack.c.bf16 %v672_v7, %v668_v5  ;;  %v2396_v16 = vpack.c.bf16 %v679_v10, %v675_v8  ;;  %v674_v17 = vld [vmem:[%s2730_s2 + $0xc0] sm:$0xff] }
  0x35   : > { %v678_v18 = vld [vmem:[%s2730_s2 + $0xe0] sm:$0xff]  ;;  %v676_v19 = vld [vmem:[%s2730_s2 + $0xd0] sm:$0xff]  ;;  %v2408_v20 = vpack.c.bf16 %v681_v12, %v677_v11  ;;  %v683_v22 = vld [vmem:[%s2730_s2 + $0x108] sm:$0xff] }
  0x36   : > { %1591 = vmatpush1.bf16.msra.mxu0 %v1590_v38  ;;  %v680_v21 = vld [vmem:[%s2730_s2 + $0xf0] sm:$0xff]  ;;  %v687_v23 = vld [vmem:[%s2730_s2 + $0x128] sm:$0xff]  ;;  %v685_v24 = vld [vmem:[%s2730_s2 + $0x118] sm:$0xff]  ;;  %v2428_v26 = vpack.c.bf16 %v678_v18, %v674_v17 }
  0x37   : > { %1623 = vmatpush1.bf16.msra.mxu1 %v1622_v39  ;;  %1625 = vmatprep.subr.bf16.mxu0 %v2286_v40  ;;  %v689_v25 = vld [vmem:[%s2730_s2 + $0x138] sm:$0xff]  ;;  %v2433_v28 = vpack.c.bf16 %v680_v21, %v676_v19  ;;  %v2435_v29 = vpack.c.bf16 %v687_v23, %v683_v22  ;;  %v682_v30 = vld [vmem:[%s2730_s2 + $0x100] sm:$0xff]  ;;  %v684_v32 = vld [vmem:[%s2730_s2 + $0x110] sm:$0xff] }
  0x38   : > { %1657 = vmatprep.subr.bf16.mxu1 %v2297_v44  ;;  %v369_v27 = vld [vmem:[%s2066_s9 + $0x18] sm:$0xff]  ;;  %v686_v31 = vld [vmem:[%s2730_s2 + $0x120] sm:$0xff]  ;;  %v2447_v33 = vpack.c.bf16 %v689_v25, %v685_v24  ;;  %v688_v34 = vld [vmem:[%s2730_s2 + $0x130] sm:$0xff]  ;;  %v436_v25 = vlaneseq }
  0x39   : > { %521 = vmatmul.mubr.f32.vlgmr.msra.gmra.mrb[0].mxu0 %v366_v50  ;;  %v691_v35 = vld [vmem:[%s2730_s2 + $0x148] sm:$0xff]  ;;  %v693_v37 = vld [vmem:[%s2730_s2 + $0x158] sm:$0xff]  ;;  %v2467_v39 = vpack.c.bf16 %v686_v31, %v682_v30  ;;  %v2471_v41 = vpack.c.bf16 %v688_v34, %v684_v32  ;;  %v690_v43 = vld [vmem:[%s2730_s2 + $0x140] sm:$0xff] }
  0x3a   : > { %610 = vmatmul.mubr.f32.vlgmr.msra.gmra.mrb[0].mxu1 %v366_v50  ;;  %1627 = vmatpush1.bf16.msra.mxu0 %v2315_v51  ;;  %v695_v36 = vld [vmem:[%s2730_s2 + $0x168] sm:$0xff]  ;;  %v697_v38 = vld [vmem:[%s2730_s2 + $0x178] sm:$0xff]  ;;  %v694_v45 = vld [vmem:[%s2730_s2 + $0x160] sm:$0xff] }
  0x3b   : > { %1659 = vmatpush1.bf16.msra.mxu1 %v2318_v52  ;;  %1629 = vmatprep.subr.bf16.mxu0 %v2320_v53  ;;  %v2473_v42 = vpack.c.bf16 %v695_v36, %v691_v35  ;;  %v692_v46 = vld [vmem:[%s2730_s2 + $0x150] sm:$0xff]  ;;  %v2485_v47 = vpack.c.bf16 %v697_v38, %v693_v37  ;;  %v699_v49 = vld [vmem:[%s2730_s2 + $0x188] sm:$0xff]  ;;  %v701_v54 = vld [vmem:[%s2730_s2 + $0x198] sm:$0xff]  ;;  %v2505_v56 = vpack.c.bf16 %v694_v45, %v690_v43 }
  0x3c   : > { %1661 = vmatprep.subr.bf16.mxu1 %v2332_v57  ;;  %526 = vmatprep.mubr.f32.mxu0 %v2001_v9  ;;  %v696_v48 = vld [vmem:[%s2730_s2 + $0x170] sm:$0xff]  ;;  %v703_v50 = vld [vmem:[%s2730_s2 + $0x1a8] sm:$0xff]  ;;  %v705_v55 = vld [vmem:[%s2730_s2 + $0x1b8] sm:$0xff] }
  0x3d   : > { %615 = vmatprep.mubr.f32.mxu1 %v2001_v9  ;;  %527 = vmatmul.mubr.f32.gmra.mrb[2].mxu0 %v367_v0  ;;  %v2509_v58 = vpack.c.bf16 %v696_v48, %v692_v46  ;;  %v2511_v59 = vpack.c.bf16 %v703_v50, %v699_v49  ;;  %v698_v60 = vld [vmem:[%s2730_s2 + $0x180] sm:$0xff]  ;;  %v700_v62 = vld [vmem:[%s2730_s2 + $0x190] sm:$0xff]  ;;  %v707_v4 = vld [vmem:[%s2730_s2 + $0x1c8] sm:$0xff] }
  0x3e   : > { %1631 = vmatpush1.bf16.msra.mxu0 %v2350_v63  ;;  %616 = vmatmul.mubr.f32.gmra.mrb[2].mxu1 %v367_v0  ;;  %v702_v61 = vld [vmem:[%s2730_s2 + $0x1a0] sm:$0xff]  ;;  %v2523_v0 = vpack.c.bf16 %v705_v55, %v701_v54  ;;  %v704_v3 = vld [vmem:[%s2730_s2 + $0x1b0] sm:$0xff]  ;;  %v711_v5 = vld [vmem:[%s2730_s2 + $0x1e8] sm:$0xff] }
  0x3f   : > { %1663 = vmatpush1.bf16.msra.mxu1 %v2355_v1  ;;  %1633 = vmatprep.subr.bf16.mxu0 %v2357_v2  ;;  %v709_v7 = vld [vmem:[%s2730_s2 + $0x1d8] sm:$0xff]  ;;  %v2541_v10 = vpack.c.bf16 %v702_v61, %v698_v60  ;;  %v2545_v11 = vpack.c.bf16 %v704_v3, %v700_v62  ;;  %v2547_v12 = vpack.c.bf16 %v711_v5, %v707_v4  ;;  %v710_v17 = vld [vmem:[%s2730_s2 + $0x1e0] sm:$0xff]  ;;  %v708_v19 = vld [vmem:[%s2730_s2 + $0x1d0] sm:$0xff] }
  0x40   : > { %1665 = vmatprep.subr.bf16.mxu1 %v2369_v6  ;;  %532 = vmatprep.mubr.f32.mxu0 %v2001_v9  ;;  %v713_v8 = vld [vmem:[%s2730_s2 + $0x1f8] sm:$0xff]  ;;  %v712_v21 = vld [vmem:[%s2730_s2 + $0x1f0] sm:$0xff]  ;;  %v714_v24 = vld [vmem:[#allocation3] sm:$0xff] }
  0x41   : > { %621 = vmatprep.mubr.f32.mxu1 %v2001_v9  ;;  %533 = vmatmul.mubr.f32.gmra.mrb[4].mxu0 %v368_v14  ;;  %v2556_v18 = vpack.c.bf16 %v713_v8, %v709_v7  ;;  %v2569_v23 = vpack.c.bf16 %v712_v21, %v708_v19  ;;  %v434_v31 = vld [vmem:[%s2731_s3] sm:$0xf] }
  0x42   : > { %1635 = vmatpush1.bf16.msra.mxu0 %v2389_v13  ;;  %622 = vmatmul.mubr.f32.gmra.mrb[4].mxu1 %v368_v14  ;;  %v706_v14 = vld [vmem:[%s2730_s2 + $0x1c0] sm:$0xff] }
  0x43   : > { %1667 = vmatpush1.bf16.msra.mxu1 %v2394_v15  ;;  %1637 = vmatprep.subr.bf16.mxu0 %v2396_v16  ;;  %v2565_v22 = vpack.c.bf16 %v710_v17, %v706_v14  ;;  %v715_v17 = vld [vmem:[#allocation4] sm:$0xff] }
  0x44   : > { %1669 = vmatprep.subr.bf16.mxu1 %v2408_v20  ;;  %538 = vmatprep.mubr.f32.mxu0 %v2001_v9 }
  0x45   : > { %627 = vmatprep.mubr.f32.mxu1 %v2001_v9  ;;  %539 = vmatmul.mubr.f32.gmra.mrb[6].mxu0 %v369_v27 }
  0x46   : > { %1639 = vmatpush1.bf16.msra.mxu0 %v2428_v26  ;;  %628 = vmatmul.mubr.f32.gmra.mrb[6].mxu1 %v369_v27  ;;  %v437_v27 = vshrl.u32 %v436_v25, 7 }
  0x47   : > { %1671 = vmatpush1.bf16.msra.mxu1 %v2433_v28  ;;  %1641 = vmatprep.subr.bf16.mxu0 %v2435_v29 }
  0x48   : > { %1673 = vmatprep.subr.bf16.mxu1 %v2447_v33  ;;  %784 = vmatprep.mubr.f32.mxu0 %v2001_v9  ;;  %v438_v30 = vsub.s32 0, %v437_v27  ;;  %v442_v32 = vsub.s32 1, %v437_v27  ;;  %v446_v35 = vsub.s32 2, %v437_v27  ;;  %v450_v48 = vsub.s32 3, %v437_v27 }
  0x49   : > { %855 = vmatprep.mubr.f32.mxu1 %v2001_v9 }
  0x4a   : > { %1643 = vmatpush1.bf16.msra.mxu0 %v2467_v39  ;;  %v2613_v34 = vrot.slane %v434_v31, %v438_v30  ;;  %v2615_v36 = vrot.slane %v434_v31, %v442_v32  ;;  %v2618_v43 = vrot.slane %v434_v31, %v446_v35  ;;  %v2622_v61 = vrot.slane %v434_v31, %v450_v48 }
  0x4b   : > { %1675 = vmatpush1.bf16.msra.mxu1 %v2471_v41  ;;  %1645 = vmatprep.subr.bf16.mxu0 %v2473_v42 }
  0x4c   : > { %1677 = vmatprep.subr.bf16.mxu1 %v2485_v47 }
  0x4e   : > { %1647 = vmatpush1.bf16.msra.mxu0 %v2505_v56 }
  0x4f   : > { %1679 = vmatpush1.bf16.msra.mxu1 %v2509_v58  ;;  %1649 = vmatprep.subr.bf16.mxu0 %v2511_v59 }
  0x50   : > { %1681 = vmatprep.subr.bf16.mxu1 %v2523_v0 }
  0x52   : > { %1651 = vmatpush1.bf16.msra.mxu0 %v2541_v10 }
  0x53   : > { %1683 = vmatpush1.bf16.msra.mxu1 %v2545_v11  ;;  %1653 = vmatprep.subr.bf16.mxu0 %v2547_v12 }
  0x54   : > { %1685 = vmatprep.subr.bf16.mxu1 %v2556_v18 }
  0x56   : > { %1655 = vmatpush1.bf16.msra.mxu0 %v2565_v22 }
  0x57   : > { %1687 = vmatpush1.bf16.msra.mxu1 %v2569_v23  ;;  %1689 = vmatprep.subr.bf16.mxu0 %v2286_v40 }
  0x58   : > { %1721 = vmatprep.subr.bf16.mxu1 %v2297_v44 }
  0x59   : > { %785 = vmatmul.mubr.f32.vlgmr.msra.gmra.mrb[0].mxu0 %v714_v24 }
  0x5a   : > { %856 = vmatmul.mubr.f32.vlgmr.msra.gmra.mrb[0].mxu1 %v714_v24  ;;  %1691 = vmatpush1.bf16.msra.mxu0 %v2315_v51 }
  0x5b   : > { %1723 = vmatpush1.bf16.msra.mxu1 %v2318_v52  ;;  %1693 = vmatprep.subr.bf16.mxu0 %v2320_v53 }
  0x5c   : > { %1725 = vmatprep.subr.bf16.mxu1 %v2332_v57  ;;  %954 = vmatprep.mubr.f32.mxu0 %v2001_v9 }
  0x5d   : > { %1025 = vmatprep.mubr.f32.mxu1 %v2001_v9 }
  0x5e   : > { %1695 = vmatpush1.bf16.msra.mxu0 %v2350_v63 }
  0x5f   : > { %1727 = vmatpush1.bf16.msra.mxu1 %v2355_v1  ;;  %1697 = vmatprep.subr.bf16.mxu0 %v2357_v2 }
  0x60   : > { %1729 = vmatprep.subr.bf16.mxu1 %v2369_v6 }
  0x62   : > { %1699 = vmatpush1.bf16.msra.mxu0 %v2389_v13 }
  0x63   : > { %1731 = vmatpush1.bf16.msra.mxu1 %v2394_v15  ;;  %1701 = vmatprep.subr.bf16.mxu0 %v2396_v16 }
  0x64   : > { %1733 = vmatprep.subr.bf16.mxu1 %v2408_v20 }
  0x66   : > { %1703 = vmatpush1.bf16.msra.mxu0 %v2428_v26 }
  0x67   : > { %1735 = vmatpush1.bf16.msra.mxu1 %v2433_v28  ;;  %1705 = vmatprep.subr.bf16.mxu0 %v2435_v29 }
  0x68   : > { %1737 = vmatprep.subr.bf16.mxu1 %v2447_v33 }
  0x6a   : > { %1707 = vmatpush1.bf16.msra.mxu0 %v2467_v39 }
  0x6b   : > { %1739 = vmatpush1.bf16.msra.mxu1 %v2471_v41  ;;  %1709 = vmatprep.subr.bf16.mxu0 %v2473_v42 }
  0x6c   : > { %1741 = vmatprep.subr.bf16.mxu1 %v2485_v47 }
  0x6e   : > { %1711 = vmatpush1.bf16.msra.mxu0 %v2505_v56 }
  0x6f   : > { %1743 = vmatpush1.bf16.msra.mxu1 %v2509_v58  ;;  %1713 = vmatprep.subr.bf16.mxu0 %v2511_v59 }
  0x70   : > { %1745 = vmatprep.subr.bf16.mxu1 %v2523_v0 }
  0x72   : > { %1715 = vmatpush1.bf16.msra.mxu0 %v2541_v10 }
  0x73   : > { %1747 = vmatpush1.bf16.msra.mxu1 %v2545_v11  ;;  %1717 = vmatprep.subr.bf16.mxu0 %v2547_v12 }
  0x74   : > { %1749 = vmatprep.subr.bf16.mxu1 %v2556_v18 }
  0x76   : > { %1719 = vmatpush1.bf16.msra.mxu0 %v2565_v22 }
  0x77   : > { %1751 = vmatpush1.bf16.msra.mxu1 %v2569_v23  ;;  %1753 = vmatprep.subr.bf16.mxu0 %v2286_v40 }
  0x78   : > { %1785 = vmatprep.subr.bf16.mxu1 %v2297_v44 }
 0x12c   : > { %v786_v37 = vpop.f32.mrb[0].mxu0 }
 0x12d   : > { %v1880_v38 = vadd.f32 %v786_v37, %v2613_v34  ;;  %v857_v45 = vpop.f32.mrb[0].mxu1  ;;  %v788_v46 = vpop.f32.mrb[1].mxu0 }
 0x12e   : > { %v1881_v49 = vadd.f32 %v788_v46, %v2615_v36  ;;  %v859_v50 = vpop.f32.mrb[1].mxu1  ;;  %v1888_v60 = vadd.f32 %v857_v45, %v2618_v43 }
 0x12f   : > { %v866_v54 = vmul.f32 0.5, %v1880_v38  ;;  %v1889_v62 = vadd.f32 %v859_v50, %v2622_v61 }
 0x130   : > { %v870_v55 = vmul.f32 0.5, %v1881_v49 }
 0x131   : > { %1937 = vtanh.f32 %v866_v54  ;;  %v875_v3 = vmul.f32 0.5, %v1889_v62 }
 0x132   : > { %1939 = vtanh.f32 %v870_v55 }
 0x133   : > { %1941 = vtanh.f32 %v1888_v60 }
 0x134   : > { %1943 = vtanh.f32 %v875_v3 }
 0x13b   : > { %v1938_v4 = vpop.eup %1937 }
 0x13c   : > { %v1940_v5 = vpop.eup %1939  ;;  %v868_v7 = vadd.f32 1.0, %v1938_v4 }
 0x13d   : > { %v872_v8 = vadd.f32 1.0, %v1940_v5  ;;  %v1942_v19 = vpop.eup %1941 }
 0x13e   : > { %v869_v14 = vmul.f32 0.5, %v868_v7  ;;  %v1944_v30 = vpop.eup %1943 }
 0x13f   : > { %v873_v21 = vmul.f32 0.5, %v872_v8  ;;  %v877_v31 = vadd.f32 1.0, %v1944_v30 }
 0x140   : > { %v880_v24 = vmul.f32 %v1942_v19, %v869_v14 }
 0x141   : > { %v879_v25 = vmul.f32 %v873_v21, %v715_v17  ;;  %v878_v32 = vmul.f32 0.5, %v877_v31 }
 0x143   : > { %v2625_v27 = vadd.f32 %v880_v24, %v879_v25 }
 0x145   : > { %1945 = vtanh.f32 %v2625_v27 }
 0x14f   : > { %v1946_v35 = vpop.eup %1945 }
 0x150   : > { %v883_v37 = vmul.f32 %v1946_v35, %v878_v32 }
 0x152   : > { %884 = vst [vmem:[%s2071_s12] sm:$0xff] %v883_v37  ;;  %955 = vmatmul.mubr.f32.vlgmr.msra.gmra.mrb[2].mxu0 %v883_v37  ;;  %1026 = vmatmul.mubr.f32.vlgmr.msra.gmra.mrb[2].mxu1 %v883_v37 }
 0x153   : > { %1755 = vmatpush1.bf16.msra.mxu0 %v2315_v51  ;;  %1787 = vmatpush1.bf16.msra.mxu1 %v2318_v52 }
 0x154   : > { %1757 = vmatprep.subr.bf16.mxu0 %v2320_v53  ;;  %1789 = vmatprep.subr.bf16.mxu1 %v2332_v57 }
 0x155   : > { %1125 = vmatprep.mubr.f32.mxu0 %v2001_v9  ;;  %1196 = vmatprep.mubr.f32.mxu1 %v2001_v9 }
 0x157   : > { %1759 = vmatpush1.bf16.msra.mxu0 %v2350_v63  ;;  %1791 = vmatpush1.bf16.msra.mxu1 %v2355_v1 }
 0x158   : > { %1761 = vmatprep.subr.bf16.mxu0 %v2357_v2  ;;  %1793 = vmatprep.subr.bf16.mxu1 %v2369_v6 }
 0x15b   : > { %1763 = vmatpush1.bf16.msra.mxu0 %v2389_v13  ;;  %1795 = vmatpush1.bf16.msra.mxu1 %v2394_v15 }
 0x15c   : > { %1765 = vmatprep.subr.bf16.mxu0 %v2396_v16  ;;  %1797 = vmatprep.subr.bf16.mxu1 %v2408_v20 }
 0x15f   : > { %1767 = vmatpush1.bf16.msra.mxu0 %v2428_v26  ;;  %1799 = vmatpush1.bf16.msra.mxu1 %v2433_v28 }
 0x160   : > { %1769 = vmatprep.subr.bf16.mxu0 %v2435_v29  ;;  %1801 = vmatprep.subr.bf16.mxu1 %v2447_v33 }
 0x163   : > { %1771 = vmatpush1.bf16.msra.mxu0 %v2467_v39  ;;  %1803 = vmatpush1.bf16.msra.mxu1 %v2471_v41 }
 0x164   : > { %1773 = vmatprep.subr.bf16.mxu0 %v2473_v42  ;;  %1805 = vmatprep.subr.bf16.mxu1 %v2485_v47 }
 0x167   : > { %1775 = vmatpush1.bf16.msra.mxu0 %v2505_v56  ;;  %1807 = vmatpush1.bf16.msra.mxu1 %v2509_v58 }
 0x168   : > { %1777 = vmatprep.subr.bf16.mxu0 %v2511_v59  ;;  %1809 = vmatprep.subr.bf16.mxu1 %v2523_v0 }
 0x16b   : > { %1779 = vmatpush1.bf16.msra.mxu0 %v2541_v10  ;;  %1811 = vmatpush1.bf16.msra.mxu1 %v2545_v11 }
 0x16c   : > { %1781 = vmatprep.subr.bf16.mxu0 %v2547_v12  ;;  %1813 = vmatprep.subr.bf16.mxu1 %v2556_v18 }
 0x16f   : > { %1783 = vmatpush1.bf16.msra.mxu0 %v2565_v22  ;;  %1815 = vmatpush1.bf16.msra.mxu1 %v2569_v23 }
 0x170   : > { %1817 = vmatprep.subr.bf16.mxu0 %v2286_v40  ;;  %1849 = vmatprep.subr.bf16.mxu1 %v2297_v44 }
 0x225   : > { %v956_v38 = vpop.f32.mrb[2].mxu0  ;;  %v1027_v45 = vpop.f32.mrb[2].mxu1 }
 0x226   : > { %v1882_v46 = vadd.f32 %v956_v38, %v2613_v34  ;;  %v958_v48 = vpop.f32.mrb[3].mxu0  ;;  %v1029_v49 = vpop.f32.mrb[3].mxu1  ;;  %v1890_v60 = vadd.f32 %v1027_v45, %v2618_v43 }
 0x227   : > { %v1883_v50 = vadd.f32 %v958_v48, %v2615_v36  ;;  %v1891_v62 = vadd.f32 %v1029_v49, %v2622_v61 }
 0x228   : > { %v1036_v54 = vmul.f32 0.5, %v1882_v46 }
 0x229   : > { %v1040_v55 = vmul.f32 0.5, %v1883_v50  ;;  %v1045_v40 = vmul.f32 0.5, %v1891_v62 }
 0x22a   : > { %1947 = vtanh.f32 %v1036_v54 }
 0x22b   : > { %1949 = vtanh.f32 %v1040_v55 }
 0x22c   : > { %1951 = vtanh.f32 %v1890_v60 }
 0x22d   : > { %1953 = vtanh.f32 %v1045_v40 }
 0x234   : > { %v1948_v3 = vpop.eup %1947 }
 0x235   : > { %v1950_v44 = vpop.eup %1949  ;;  %v1038_v4 = vadd.f32 1.0, %v1948_v3 }
 0x236   : > { %v1042_v5 = vadd.f32 1.0, %v1950_v44  ;;  %v1952_v8 = vpop.eup %1951 }
 0x237   : > { %v1039_v7 = vmul.f32 0.5, %v1038_v4  ;;  %v1954_v24 = vpop.eup %1953 }
 0x238   : > { %v1043_v14 = vmul.f32 0.5, %v1042_v5  ;;  %v1047_v25 = vadd.f32 1.0, %v1954_v24 }
 0x239   : > { %v1050_v17 = vmul.f32 %v1952_v8, %v1039_v7 }
 0x23a   : > { %v1049_v19 = vmul.f32 %v1043_v14, %v2625_v27  ;;  %v1048_v30 = vmul.f32 0.5, %v1047_v25 }
 0x23c   : > { %v2668_v21 = vadd.f32 %v1050_v17, %v1049_v19 }
 0x23e   : > { %1955 = vtanh.f32 %v2668_v21 }
 0x248   : > { %v1956_v31 = vpop.eup %1955 }
 0x249   : > { %v1053_v32 = vmul.f32 %v1956_v31, %v1048_v30 }
 0x24b   : > { %1553 = vst [vmem:[%s2071_s12 + $0x8] sm:$0xff] %v1053_v32  ;;  %1126 = vmatmul.mubr.f32.vlgmr.msra.gmra.mrb[4].mxu0 %v1053_v32  ;;  %1197 = vmatmul.mubr.f32.vlgmr.msra.gmra.mrb[4].mxu1 %v1053_v32 }
 0x24c   : > { %1819 = vmatpush1.bf16.msra.mxu0 %v2315_v51  ;;  %1851 = vmatpush1.bf16.msra.mxu1 %v2318_v52 }
 0x24d   : > { %1821 = vmatprep.subr.bf16.mxu0 %v2320_v53  ;;  %1853 = vmatprep.subr.bf16.mxu1 %v2332_v57 }
 0x24e   : > { %1296 = vmatprep.mubr.f32.mxu0 %v2001_v9  ;;  %1367 = vmatprep.mubr.f32.mxu1 %v2001_v9 }
 0x250   : > { %1823 = vmatpush1.bf16.msra.mxu0 %v2350_v63  ;;  %1855 = vmatpush1.bf16.msra.mxu1 %v2355_v1 }
 0x251   : > { %1825 = vmatprep.subr.bf16.mxu0 %v2357_v2  ;;  %1857 = vmatprep.subr.bf16.mxu1 %v2369_v6 }
 0x254   : > { %1827 = vmatpush1.bf16.msra.mxu0 %v2389_v13  ;;  %1859 = vmatpush1.bf16.msra.mxu1 %v2394_v15 }
 0x255   : > { %1829 = vmatprep.subr.bf16.mxu0 %v2396_v16  ;;  %1861 = vmatprep.subr.bf16.mxu1 %v2408_v20 }
 0x258   : > { %1831 = vmatpush1.bf16.msra.mxu0 %v2428_v26  ;;  %1863 = vmatpush1.bf16.msra.mxu1 %v2433_v28 }
 0x259   : > { %1833 = vmatprep.subr.bf16.mxu0 %v2435_v29  ;;  %1865 = vmatprep.subr.bf16.mxu1 %v2447_v33 }
 0x25c   : > { %1835 = vmatpush1.bf16.msra.mxu0 %v2467_v39  ;;  %1867 = vmatpush1.bf16.msra.mxu1 %v2471_v41 }
 0x25d   : > { %1837 = vmatprep.subr.bf16.mxu0 %v2473_v42  ;;  %1869 = vmatprep.subr.bf16.mxu1 %v2485_v47 }
 0x260   : > { %1839 = vmatpush1.bf16.msra.mxu0 %v2505_v56  ;;  %1871 = vmatpush1.bf16.msra.mxu1 %v2509_v58 }
 0x261   : > { %1841 = vmatprep.subr.bf16.mxu0 %v2511_v59  ;;  %1873 = vmatprep.subr.bf16.mxu1 %v2523_v0 }
 0x264   : > { %1843 = vmatpush1.bf16.msra.mxu0 %v2541_v10  ;;  %1875 = vmatpush1.bf16.msra.mxu1 %v2545_v11 }
 0x265   : > { %1845 = vmatprep.subr.bf16.mxu0 %v2547_v12  ;;  %1877 = vmatprep.subr.bf16.mxu1 %v2556_v18 }
 0x268   : > { %1847 = vmatpush1.bf16.msra.mxu0 %v2565_v22  ;;  %1879 = vmatpush1.bf16.msra.mxu1 %v2569_v23 }
 0x31e   : > { %v1127_v9 = vpop.f32.mrb[4].mxu0  ;;  %v1198_v51 = vpop.f32.mrb[4].mxu1 }
 0x31f   : > { %v1884_v52 = vadd.f32 %v1127_v9, %v2613_v34  ;;  %v1129_v53 = vpop.f32.mrb[5].mxu0  ;;  %v1200_v57 = vpop.f32.mrb[5].mxu1  ;;  %v1892_v6 = vadd.f32 %v1198_v51, %v2618_v43 }
 0x320   : > { %v1885_v63 = vadd.f32 %v1129_v53, %v2615_v36  ;;  %v1893_v13 = vadd.f32 %v1200_v57, %v2622_v61 }
 0x321   : > { %v1207_v1 = vmul.f32 0.5, %v1884_v52 }
 0x322   : > { %v1211_v2 = vmul.f32 0.5, %v1885_v63  ;;  %v1216_v15 = vmul.f32 0.5, %v1893_v13 }
 0x323   : > { %1957 = vtanh.f32 %v1207_v1 }
 0x324   : > { %1959 = vtanh.f32 %v1211_v2 }
 0x325   : > { %1961 = vtanh.f32 %v1892_v6 }
 0x326   : > { %1963 = vtanh.f32 %v1216_v15 }
 0x32d   : > { %v1958_v16 = vpop.eup %1957 }
 0x32e   : > { %v1960_v20 = vpop.eup %1959  ;;  %v1209_v26 = vadd.f32 1.0, %v1958_v16 }
 0x32f   : > { %v1213_v28 = vadd.f32 1.0, %v1960_v20  ;;  %v1962_v33 = vpop.eup %1961 }
 0x330   : > { %v1210_v29 = vmul.f32 0.5, %v1209_v26  ;;  %v1964_v56 = vpop.eup %1963 }
 0x331   : > { %v1214_v39 = vmul.f32 0.5, %v1213_v28  ;;  %v1218_v58 = vadd.f32 1.0, %v1964_v56 }
 0x332   : > { %v1221_v41 = vmul.f32 %v1962_v33, %v1210_v29 }
 0x333   : > { %v1220_v42 = vmul.f32 %v1214_v39, %v2668_v21  ;;  %v1219_v59 = vmul.f32 0.5, %v1218_v58 }
 0x335   : > { %v1222_v47 = vadd.f32 %v1221_v41, %v1220_v42 }
 0x337   : > { %1965 = vtanh.f32 %v1222_v47 }
 0x341   : > { %v1966_v0 = vpop.eup %1965 }
 0x342   : > { %v1224_v10 = vmul.f32 %v1966_v0, %v1219_v59 }
 0x344   : > { %1554 = vst [vmem:[%s2071_s12 + $0x10] sm:$0xff] %v1224_v10  ;;  %1297 = vmatmul.mubr.f32.vlgmr.msra.gmra.mrb[6].mxu0 %v1224_v10  ;;  %1368 = vmatmul.mubr.f32.vlgmr.msra.gmra.mrb[6].mxu1 %v1224_v10 }
 0x417   : > { %v1298_v11 = vpop.f32.mrb[6].mxu0  ;;  %v1369_v12 = vpop.f32.mrb[6].mxu1 }
 0x418   : > { %v1886_v18 = vadd.f32 %v1298_v11, %v2613_v34  ;;  %v1300_v22 = vpop.f32.mrb[7].mxu0  ;;  %v1371_v23 = vpop.f32.mrb[7].mxu1  ;;  %v1894_v38 = vadd.f32 %v1369_v12, %v2618_v43 }
 0x419   : > { %v1887_v27 = vadd.f32 %v1300_v22, %v2615_v36  ;;  %v1895_v45 = vadd.f32 %v1371_v23, %v2622_v61 }
 0x41a   : > { %v1378_v35 = vmul.f32 0.5, %v1886_v18 }
 0x41b   : > { %v1382_v37 = vmul.f32 0.5, %v1887_v27  ;;  %v1387_v46 = vmul.f32 0.5, %v1895_v45 }
 0x41c   : > { %1967 = vtanh.f32 %v1378_v35 }
 0x41d   : > { %1969 = vtanh.f32 %v1382_v37 }
 0x41e   : > { %1971 = vtanh.f32 %v1894_v38 }
 0x41f   : > { %1973 = vtanh.f32 %v1387_v46 }
 0x426   : > { %v1968_v48 = vpop.eup %1967 }
 0x427   : > { %v1970_v49 = vpop.eup %1969  ;;  %v1380_v50 = vadd.f32 1.0, %v1968_v48 }
 0x428   : > { %v1384_v54 = vadd.f32 1.0, %v1970_v49  ;;  %v1972_v55 = vpop.eup %1971 }
 0x429   : > { %v1381_v34 = vmul.f32 0.5, %v1380_v50  ;;  %v1974_v43 = vpop.eup %1973 }
 0x42a   : > { %v1385_v60 = vmul.f32 0.5, %v1384_v54  ;;  %v1389_v3 = vadd.f32 1.0, %v1974_v43 }
 0x42b   : > { %v1392_v36 = vmul.f32 %v1972_v55, %v1381_v34 }
 0x42c   : > { %v1391_v62 = vmul.f32 %v1385_v60, %v1222_v47  ;;  %v1390_v44 = vmul.f32 0.5, %v1389_v3 }
 0x42e   : > { %v1393_v40 = vadd.f32 %v1392_v36, %v1391_v62 }
 0x430   : > { %1975 = vtanh.f32 %v1393_v40  ;;  %1399 = vst [vmem:[#allocation4] sm:$0xff] %v1393_v40  ;;  %1404 = vst [vmem:[%s2735_s7] sm:$0xff] (!%p1556_p6), %v1393_v40 }
 0x437   : > { %1403 = sbr.rel (%p1556_p6) target bundleno = 1086 (0x43e), region = 52 }
 0x43a   : > { %v1976_v4 = vpop.eup %1975 }
 0x43b   : > { %v1395_v61 = vmul.f32 %v1976_v4, %v1390_v44 }
 0x43d   : > { %1555 = vst [vmem:[%s2071_s12 + $0x18] sm:$0xff] %v1395_v61  ;;  %1398 = vst [vmem:[#allocation3] sm:$0xff] %v1395_v61 }
 0x43e PF: > { %s18_s26 = sadd.s32 1, %s1999_s26   ;;  %s2736_s24 = smov %s1995_s25 }
 0x43f   : > { %p15_p7 = scmp.ge.s32.totalorder %s18_s26, 4   ;;  %s2737_s25 = smov %s2739_s27 }
 0x441   :  { %17 = sbr.rel (!%p15_p7) target bundleno = 2 (0x2), region = 106 }

</bundles_post_ra>
